<compile_context>
chip_gen: v6e
topology: v6e:2x2x1
jax: 0.10.0
libtpu: 0.0.40
codegen_flags: <defaults>
</compile_context>

<pallas_src>
import functools

import jax
import jax.numpy as jnp
from jax.experimental import pallas as pl
from jax.experimental.pallas import tpu as pltpu

_LANE = 128      # lane width (last dim granularity)
_SUBLANE = 8     # f32 sublane granularity (second-to-last dim)
_N_MID = 4       # the module always has 4 hidden H->H layers


def _round_up(x, m):
    return ((x + m - 1) // m) * m


def _vmem_capacity_bytes():
    try:
        return int(pltpu.get_tpu_info().vmem_capacity_bytes)
    except Exception:
        return 64 << 20   # conservative (v7x-sized) fallback


def _default_use_gauss():
    # Gauss 3-matmul trades one MXU matmul for cheap VPU adds: a win in the
    # compute-bound regime (v5e, v7x) but hidden on DMA-leaning v6e.
    try:
        kind = jax.devices()[0].device_kind.lower()
    except Exception:
        return False
    return "v6" not in kind


def _cgemm(xr, xi, wr, wi, br, bi, use_gauss):
    """Complex (xr + i*xi) @ (wr + i*wi) + (br + i*bi), f32 MXU accumulation.

    Bias initialises the accumulator (broadcast hoisted into the add tree).
    """
    if use_gauss:
        t1 = jnp.dot(xr, wr, preferred_element_type=jnp.float32)
        t2 = jnp.dot(xi, wi, preferred_element_type=jnp.float32)
        t3 = jnp.dot(xr + xi, wr + wi, preferred_element_type=jnp.float32)
        yr = br + (t1 - t2)
        yi = bi + (t3 - t1 - t2)
    else:
        yr = (br + jnp.dot(xr, wr, preferred_element_type=jnp.float32)
                 - jnp.dot(xi, wi, preferred_element_type=jnp.float32))
        yi = (bi + jnp.dot(xr, wi, preferred_element_type=jnp.float32)
                 + jnp.dot(xi, wr, preferred_element_type=jnp.float32))
    return yr, yi


def _fused_mlp_kernel(zr_ref, zi_ref,
                      w0r_ref, w0i_ref, wmr_ref, wmi_ref, wlr_ref, wli_ref,
                      b0r_ref, b0i_ref, bmr_ref, bmi_ref, blr_ref, bli_ref,
                      or_ref, oi_ref, ar_ref, ai_ref,
                      *, n_mid, use_gauss, act_dtype):
    """One batch tile through all 6 complex layers; weights are VMEM-resident."""
    # Layer 0: (bt, in_pad) @ (in_pad, h_pad) -> CReLU -> bf16 scratch carry.
    xr = zr_ref[...].astype(act_dtype)
    xi = zi_ref[...].astype(act_dtype)
    yr, yi = _cgemm(xr, xi, w0r_ref[...], w0i_ref[...],
                    b0r_ref[...], b0i_ref[...], use_gauss)
    ar_ref[...] = jnp.maximum(yr, 0.0).astype(act_dtype)
    ai_ref[...] = jnp.maximum(yi, 0.0).astype(act_dtype)

    # Middle H->H layers (statically unrolled, resident-weight static slices).
    for l in range(n_mid):
        yr, yi = _cgemm(ar_ref[...], ai_ref[...], wmr_ref[l], wmi_ref[l],
                        bmr_ref[l], bmi_ref[l], use_gauss)
        ar_ref[...] = jnp.maximum(yr, 0.0).astype(act_dtype)
        ai_ref[...] = jnp.maximum(yi, 0.0).astype(act_dtype)

    # Last layer: (bt, h_pad) @ (h_pad, out_pad), no activation; lane-dense output.
    yr, yi = _cgemm(ar_ref[...], ai_ref[...], wlr_ref[...], wli_ref[...],
                    blr_ref[...], bli_ref[...], use_gauss)
    or_ref[...] = yr
    oi_ref[...] = yi


def init_params(key, latent_dim=16, hidden_units=1000, out_dim=2,
                weight_dtype=jnp.bfloat16):
    """Shape-trimmed, zero-padded parameters mirroring the 6 complex Linear layers."""
    assert out_dim <= _LANE, "out_dim must fit in a single lane tile (<=128)"
    in_pad = _round_up(latent_dim, _LANE)
    h_pad = _round_up(hidden_units, _LANE)
    out_pad = _LANE

    def linear(k, din, dout, kpad, npad):
        k_wr, k_wi, k_br, k_bi = jax.random.split(k, 4)
        bound = 1.0 / (din ** 0.5)
        wr = jnp.zeros((kpad, npad), weight_dtype).at[:din, :dout].set(
            jax.random.uniform(k_wr, (din, dout), jnp.float32, -bound, bound
                               ).astype(weight_dtype))
        wi = jnp.zeros((kpad, npad), weight_dtype).at[:din, :dout].set(
            jax.random.uniform(k_wi, (din, dout), jnp.float32, -bound, bound
                               ).astype(weight_dtype))
        br = jnp.zeros((1, npad), jnp.float32).at[0, :dout].set(
            jax.random.uniform(k_br, (dout,), jnp.float32, -bound, bound))
        bi = jnp.zeros((1, npad), jnp.float32).at[0, :dout].set(
            jax.random.uniform(k_bi, (dout,), jnp.float32, -bound, bound))
        return wr, wi, br, bi

    keys = jax.random.split(key, _N_MID + 2)
    w0r, w0i, b0r, b0i = linear(keys[0], latent_dim, hidden_units, in_pad, h_pad)
    mids = [linear(keys[1 + i], hidden_units, hidden_units, h_pad, h_pad)
            for i in range(_N_MID)]
    wmr = jnp.stack([m[0] for m in mids])
    wmi = jnp.stack([m[1] for m in mids])
    bmr = jnp.stack([m[2] for m in mids])
    bmi = jnp.stack([m[3] for m in mids])
    wlr, wli, blr, bli = linear(keys[-1], hidden_units, out_dim, h_pad, out_pad)

    return dict(w0r=w0r, w0i=w0i, wmr=wmr, wmi=wmi, wlr=wlr, wli=wli,
                b0r=b0r, b0i=b0i, bmr=bmr, bmi=bmi, blr=blr, bli=bli,
                latent_dim=latent_dim, hidden_units=hidden_units, out_dim=out_dim,
                in_pad=in_pad, h_pad=h_pad, out_pad=out_pad)


def cv_factor_vae_discriminator(z, params, *, batch_tile=None, use_gauss=None,
                                interpret=False):
    """Forward pass. z: complex64 [batch, latent_dim] -> complex64 [batch, out_dim]."""
    latent_dim = params["latent_dim"]
    out_dim = params["out_dim"]
    in_pad, h_pad, out_pad = params["in_pad"], params["h_pad"], params["out_pad"]
    w_dtype = params["wmr"].dtype
    w_item = jnp.dtype(w_dtype).itemsize
    if use_gauss is None:
        use_gauss = _default_use_gauss()

    batch = z.shape[0]

    # ----- generation-aware VMEM budget & batch-tile choice -------------------
    wbytes = 2 * w_item * (in_pad * h_pad + _N_MID * h_pad * h_pad + h_pad * out_pad)
    bbytes = 2 * 4 * ((1 + _N_MID) * h_pad + out_pad)

    def vmem_need(bt):
        return (2 * wbytes                    # resident weights (allow 2 buffers)
                + 2 * bbytes                  # resident biases
                + 2 * 2 * bt * in_pad * 4     # zr/zi blocks, double-buffered
                + 2 * 2 * bt * out_pad * 4    # output blocks, double-buffered
                + 2 * bt * h_pad * w_item)    # bf16 activation scratch

    vmem_budget = _vmem_capacity_bytes() - (6 << 20)
    if batch_tile is None:
        batch_tile = min(512, _round_up(batch, _SUBLANE))
        while batch_tile > _SUBLANE and vmem_need(batch_tile) > vmem_budget:
            batch_tile //= 2
        batch_tile = max(_round_up(batch_tile, _SUBLANE), _SUBLANE)
    b_pad = _round_up(batch, batch_tile)
    vmem_limit = int(min(max(vmem_need(batch_tile) + (8 << 20), 32 << 20),
                         max(vmem_budget, 32 << 20)))

    # ----- trimmed inputs: pad features only to one lane tile -----------------
    zr = jnp.pad(jnp.real(z).astype(jnp.float32),
                 ((0, b_pad - batch), (0, in_pad - latent_dim)))
    zi = jnp.pad(jnp.imag(z).astype(jnp.float32),
                 ((0, b_pad - batch), (0, in_pad - latent_dim)))

    grid = (b_pad // batch_tile,)

    z_spec = pl.BlockSpec((batch_tile, in_pad), lambda b: (b, 0))
    out_spec = pl.BlockSpec((batch_tile, out_pad), lambda b: (b, 0))
    # Full-array blocks with constant index_maps: fetched once on the first grid
    # step, then VMEM-resident across all batch tiles (no per-tile re-streaming).
    w0_spec = pl.BlockSpec((in_pad, h_pad), lambda b: (0, 0))
    wm_spec = pl.BlockSpec((_N_MID, h_pad, h_pad), lambda b: (0, 0, 0))
    wl_spec = pl.BlockSpec((h_pad, out_pad), lambda b: (0, 0))
    b0_spec = pl.BlockSpec((1, h_pad), lambda b: (0, 0))
    bm_spec = pl.BlockSpec((_N_MID, 1, h_pad), lambda b: (0, 0, 0))
    bl_spec = pl.BlockSpec((1, out_pad), lambda b: (0, 0))

    kernel = functools.partial(_fused_mlp_kernel, n_mid=_N_MID,
                               use_gauss=use_gauss, act_dtype=w_dtype)

    out_r, out_i = pl.pallas_call(
        kernel,
        out_shape=(jax.ShapeDtypeStruct((b_pad, out_pad), jnp.float32),
                   jax.ShapeDtypeStruct((b_pad, out_pad), jnp.float32)),
        grid_spec=pltpu.PrefetchScalarGridSpec(
            num_scalar_prefetch=0,
            grid=grid,
            in_specs=[z_spec, z_spec,
                      w0_spec, w0_spec, wm_spec, wm_spec, wl_spec, wl_spec,
                      b0_spec, b0_spec, bm_spec, bm_spec, bl_spec, bl_spec],
            out_specs=[out_spec, out_spec],
            scratch_shapes=[pltpu.VMEM((batch_tile, h_pad), w_dtype),
                            pltpu.VMEM((batch_tile, h_pad), w_dtype)]),
        compiler_params=pltpu.CompilerParams(
            # Batch tiles are independent -> "parallel" lets v7x's two TensorCores
            # split them (harmless on single-TC v5e/v6e).
            dimension_semantics=("parallel",),
            vmem_limit_bytes=vmem_limit),
        interpret=interpret,
    )(zr, zi,
      params["w0r"], params["w0i"], params["wmr"], params["wmi"],
      params["wlr"], params["wli"],
      params["b0r"], params["b0i"], params["bmr"], params["bmi"],
      params["blr"], params["bli"])

    return jax.lax.complex(out_r[:batch, :out_dim], out_i[:batch, :out_dim])


def _reference(z, params, use_gauss):
    """Pure-JAX reference matched to the kernel's mixed precision and matmul form."""
    latent_dim = params["latent_dim"]
    out_dim = params["out_dim"]
    in_pad = params["in_pad"]
    cdt = params["wmr"].dtype

    xr = jnp.pad(jnp.real(z).astype(jnp.float32),
                 ((0, 0), (0, in_pad - latent_dim))).astype(cdt)
    xi = jnp.pad(jnp.imag(z).astype(jnp.float32),
                 ((0, 0), (0, in_pad - latent_dim))).astype(cdt)

    yr, yi = _cgemm(xr, xi, params["w0r"], params["w0i"],
                    params["b0r"], params["b0i"], use_gauss)
    for l in range(_N_MID):
        xr = jnp.maximum(yr, 0.0).astype(cdt)
        xi = jnp.maximum(yi, 0.0).astype(cdt)
        yr, yi = _cgemm(xr, xi, params["wmr"][l], params["wmi"][l],
                        params["bmr"][l], params["bmi"][l], use_gauss)
    xr = jnp.maximum(yr, 0.0).astype(cdt)
    xi = jnp.maximum(yi, 0.0).astype(cdt)
    yr, yi = _cgemm(xr, xi, params["wlr"], params["wli"],
                    params["blr"], params["bli"], use_gauss)
    return jax.lax.complex(yr[:, :out_dim], yi[:, :out_dim])


if __name__ == "__main__":
    # Small shapes consistent with the module: batch=8, latent_dim=16, hidden_units=32
    # (all padded internally to 128-lane tiles).
    latent_dim, hidden_units, batch = 16, 32, 8

    key = jax.random.PRNGKey(0)
    key, kz_r, kz_i = jax.random.split(key, 3)
    z = jax.lax.complex(
        jax.random.normal(kz_r, (batch, latent_dim), jnp.float32),
        jax.random.normal(kz_i, (batch, latent_dim), jnp.float32),
    )

    params = init_params(key, latent_dim=latent_dim, hidden_units=hidden_units)

    use_gauss = _default_use_gauss()
    out = cv_factor_vae_discriminator(z, params, use_gauss=use_gauss)
    out = jax.block_until_ready(out)

    ref = _reference(z, params, use_gauss)
    assert out.shape == (batch, 2) and out.dtype == jnp.complex64
    err = float(jnp.max(jnp.abs(out - ref)))
    assert jnp.allclose(out, ref, atol=5e-3, rtol=5e-3), f"max abs err = {err}"

    print("KERNEL_OK")
</pallas_src>

<mosaic_0001>
module attributes {stable_mosaic.version = 11 : i64} {
  func.func @_fused_mlp_kernel(%arg0: i32, %arg1: memref<8x128xf32, #tpu.memory_space<vmem>>, %arg2: memref<8x128xf32, #tpu.memory_space<vmem>>, %arg3: memref<128x128xbf16, #tpu.memory_space<vmem>>, %arg4: memref<128x128xbf16, #tpu.memory_space<vmem>>, %arg5: memref<4x128x128xbf16, #tpu.memory_space<vmem>>, %arg6: memref<4x128x128xbf16, #tpu.memory_space<vmem>>, %arg7: memref<128x128xbf16, #tpu.memory_space<vmem>>, %arg8: memref<128x128xbf16, #tpu.memory_space<vmem>>, %arg9: memref<1x128xf32, #tpu.memory_space<vmem>>, %arg10: memref<1x128xf32, #tpu.memory_space<vmem>>, %arg11: memref<4x1x128xf32, #tpu.memory_space<vmem>>, %arg12: memref<4x1x128xf32, #tpu.memory_space<vmem>>, %arg13: memref<1x128xf32, #tpu.memory_space<vmem>>, %arg14: memref<1x128xf32, #tpu.memory_space<vmem>>, %arg15: memref<8x128xf32, #tpu.memory_space<vmem>>, %arg16: memref<8x128xf32, #tpu.memory_space<vmem>>, %arg17: memref<8x128xbf16, #tpu.memory_space<vmem>>, %arg18: memref<8x128xbf16, #tpu.memory_space<vmem>>) attributes {dimension_semantics = [#tpu.dimension_semantics<parallel>], iteration_bounds = array<i64: 1>, scalar_prefetch = 0 : i64, scratch_operands = 2 : i64, tpu.core_type = #tpu.core_type<tc>, window_params = [{transform_indices = @transform_0, window_bounds = array<i64: 8, 128>}, {transform_indices = @transform_1, window_bounds = array<i64: 8, 128>}, {pipeline_mode = #tpu.pipeline_mode<synchronous>, transform_indices = @transform_2, window_bounds = array<i64: 128, 128>}, {pipeline_mode = #tpu.pipeline_mode<synchronous>, transform_indices = @transform_3, window_bounds = array<i64: 128, 128>}, {pipeline_mode = #tpu.pipeline_mode<synchronous>, transform_indices = @transform_4, window_bounds = array<i64: 4, 128, 128>}, {pipeline_mode = #tpu.pipeline_mode<synchronous>, transform_indices = @transform_5, window_bounds = array<i64: 4, 128, 128>}, {pipeline_mode = #tpu.pipeline_mode<synchronous>, transform_indices = @transform_6, window_bounds = array<i64: 128, 128>}, {pipeline_mode = #tpu.pipeline_mode<synchronous>, transform_indices = @transform_7, window_bounds = array<i64: 128, 128>}, {pipeline_mode = #tpu.pipeline_mode<synchronous>, transform_indices = @transform_8, window_bounds = array<i64: 1, 128>}, {pipeline_mode = #tpu.pipeline_mode<synchronous>, transform_indices = @transform_9, window_bounds = array<i64: 1, 128>}, {pipeline_mode = #tpu.pipeline_mode<synchronous>, transform_indices = @transform_10, window_bounds = array<i64: 4, 1, 128>}, {pipeline_mode = #tpu.pipeline_mode<synchronous>, transform_indices = @transform_11, window_bounds = array<i64: 4, 1, 128>}, {pipeline_mode = #tpu.pipeline_mode<synchronous>, transform_indices = @transform_12, window_bounds = array<i64: 1, 128>}, {pipeline_mode = #tpu.pipeline_mode<synchronous>, transform_indices = @transform_13, window_bounds = array<i64: 1, 128>}, {transform_indices = @transform_14, window_bounds = array<i64: 8, 128>}, {transform_indices = @transform_15, window_bounds = array<i64: 8, 128>}]} {
    %c0 = arith.constant 0 : index
    %c0_0 = arith.constant 0 : index
    %0 = vector.load %arg1[%c0, %c0_0] : memref<8x128xf32, #tpu.memory_space<vmem>>, vector<8x128xf32>
    %1 = arith.truncf %0 : vector<8x128xf32> to vector<8x128xbf16>
    %c0_1 = arith.constant 0 : index
    %c0_2 = arith.constant 0 : index
    %2 = vector.load %arg2[%c0_1, %c0_2] : memref<8x128xf32, #tpu.memory_space<vmem>>, vector<8x128xf32>
    %3 = arith.truncf %2 : vector<8x128xf32> to vector<8x128xbf16>
    %c0_3 = arith.constant 0 : index
    %c0_4 = arith.constant 0 : index
    %4 = vector.load %arg3[%c0_3, %c0_4] : memref<128x128xbf16, #tpu.memory_space<vmem>>, vector<128x128xbf16>
    %c0_5 = arith.constant 0 : index
    %c0_6 = arith.constant 0 : index
    %5 = vector.load %arg4[%c0_5, %c0_6] : memref<128x128xbf16, #tpu.memory_space<vmem>>, vector<128x128xbf16>
    %c0_7 = arith.constant 0 : index
    %c0_8 = arith.constant 0 : index
    %6 = vector.load %arg9[%c0_7, %c0_8] : memref<1x128xf32, #tpu.memory_space<vmem>>, vector<1x128xf32>
    %c0_9 = arith.constant 0 : index
    %c0_10 = arith.constant 0 : index
    %7 = vector.load %arg10[%c0_9, %c0_10] : memref<1x128xf32, #tpu.memory_space<vmem>>, vector<1x128xf32>
    %cst = arith.constant dense<0.000000e+00> : vector<8x128xf32>
    %8 = tpu.matmul %1, %4, %cst {dimension_numbers = #tpu.dot_dimension_numbers<[1], [0], [0], [1], [0, 0, 1, 1], [], []>} : vector<8x128xbf16>, vector<128x128xbf16>, vector<8x128xf32> -> vector<8x128xf32>
    %cst_11 = arith.constant dense<0.000000e+00> : vector<8x128xf32>
    %9 = tpu.matmul %3, %5, %cst_11 {dimension_numbers = #tpu.dot_dimension_numbers<[1], [0], [0], [1], [0, 0, 1, 1], [], []>} : vector<8x128xbf16>, vector<128x128xbf16>, vector<8x128xf32> -> vector<8x128xf32>
    %10 = arith.addf %1, %3 : vector<8x128xbf16>
    %11 = arith.addf %4, %5 : vector<128x128xbf16>
    %cst_12 = arith.constant dense<0.000000e+00> : vector<8x128xf32>
    %12 = tpu.matmul %10, %11, %cst_12 {dimension_numbers = #tpu.dot_dimension_numbers<[1], [0], [0], [1], [0, 0, 1, 1], [], []>} : vector<8x128xbf16>, vector<128x128xbf16>, vector<8x128xf32> -> vector<8x128xf32>
    %13 = arith.subf %8, %9 : vector<8x128xf32>
    %14 = vector.broadcast %6 : vector<1x128xf32> to vector<8x128xf32>
    %15 = arith.addf %14, %13 : vector<8x128xf32>
    %16 = arith.subf %12, %8 : vector<8x128xf32>
    %17 = arith.subf %16, %9 : vector<8x128xf32>
    %18 = vector.broadcast %7 : vector<1x128xf32> to vector<8x128xf32>
    %19 = arith.addf %18, %17 : vector<8x128xf32>
    %cst_13 = arith.constant 0.000000e+00 : f32
    %20 = vector.broadcast %cst_13 : f32 to vector<8x128xf32>
    %21 = arith.maximumf %15, %20 : vector<8x128xf32>
    %22 = arith.truncf %21 : vector<8x128xf32> to vector<8x128xbf16>
    %c0_14 = arith.constant 0 : index
    %c0_15 = arith.constant 0 : index
    %23 = vector.load %arg17[%c0_14, %c0_15] : memref<8x128xbf16, #tpu.memory_space<vmem>>, vector<8x128xbf16>
    tpu.vector_store %arg17[%c0_14, %c0_15], %22 {strides = array<i32>} : memref<8x128xbf16, #tpu.memory_space<vmem>>, vector<8x128xbf16>,
    %cst_16 = arith.constant 0.000000e+00 : f32
    %24 = vector.broadcast %cst_16 : f32 to vector<8x128xf32>
    %25 = arith.maximumf %19, %24 : vector<8x128xf32>
    %26 = arith.truncf %25 : vector<8x128xf32> to vector<8x128xbf16>
    %c0_17 = arith.constant 0 : index
    %c0_18 = arith.constant 0 : index
    %27 = vector.load %arg18[%c0_17, %c0_18] : memref<8x128xbf16, #tpu.memory_space<vmem>>, vector<8x128xbf16>
    tpu.vector_store %arg18[%c0_17, %c0_18], %26 {strides = array<i32>} : memref<8x128xbf16, #tpu.memory_space<vmem>>, vector<8x128xbf16>,
    %c0_19 = arith.constant 0 : index
    %c0_20 = arith.constant 0 : index
    %28 = vector.load %arg17[%c0_19, %c0_20] : memref<8x128xbf16, #tpu.memory_space<vmem>>, vector<8x128xbf16>
    %c0_21 = arith.constant 0 : index
    %c0_22 = arith.constant 0 : index
    %29 = vector.load %arg18[%c0_21, %c0_22] : memref<8x128xbf16, #tpu.memory_space<vmem>>, vector<8x128xbf16>
    %c0_23 = arith.constant 0 : index
    %c0_24 = arith.constant 0 : index
    %c0_25 = arith.constant 0 : index
    %30 = vector.load %arg5[%c0_23, %c0_24, %c0_25] : memref<4x128x128xbf16, #tpu.memory_space<vmem>>, vector<1x128x128xbf16>
    %31 = vector.shape_cast %30 : vector<1x128x128xbf16> to vector<128x128xbf16>
    %c0_26 = arith.constant 0 : index
    %c0_27 = arith.constant 0 : index
    %c0_28 = arith.constant 0 : index
    %32 = vector.load %arg6[%c0_26, %c0_27, %c0_28] : memref<4x128x128xbf16, #tpu.memory_space<vmem>>, vector<1x128x128xbf16>
    %33 = vector.shape_cast %32 : vector<1x128x128xbf16> to vector<128x128xbf16>
    %c0_29 = arith.constant 0 : index
    %c0_30 = arith.constant 0 : index
    %c0_31 = arith.constant 0 : index
    %34 = vector.load %arg11[%c0_29, %c0_30, %c0_31] : memref<4x1x128xf32, #tpu.memory_space<vmem>>, vector<1x1x128xf32>
    %35 = vector.shape_cast %34 : vector<1x1x128xf32> to vector<1x128xf32>
    %c0_32 = arith.constant 0 : index
    %c0_33 = arith.constant 0 : index
    %c0_34 = arith.constant 0 : index
    %36 = vector.load %arg12[%c0_32, %c0_33, %c0_34] : memref<4x1x128xf32, #tpu.memory_space<vmem>>, vector<1x1x128xf32>
    %37 = vector.shape_cast %36 : vector<1x1x128xf32> to vector<1x128xf32>
    %cst_35 = arith.constant dense<0.000000e+00> : vector<8x128xf32>
    %38 = tpu.matmul %28, %31, %cst_35 {dimension_numbers = #tpu.dot_dimension_numbers<[1], [0], [0], [1], [0, 0, 1, 1], [], []>} : vector<8x128xbf16>, vector<128x128xbf16>, vector<8x128xf32> -> vector<8x128xf32>
    %cst_36 = arith.constant dense<0.000000e+00> : vector<8x128xf32>
    %39 = tpu.matmul %29, %33, %cst_36 {dimension_numbers = #tpu.dot_dimension_numbers<[1], [0], [0], [1], [0, 0, 1, 1], [], []>} : vector<8x128xbf16>, vector<128x128xbf16>, vector<8x128xf32> -> vector<8x128xf32>
    %40 = arith.addf %28, %29 : vector<8x128xbf16>
    %41 = arith.addf %31, %33 : vector<128x128xbf16>
    %cst_37 = arith.constant dense<0.000000e+00> : vector<8x128xf32>
    %42 = tpu.matmul %40, %41, %cst_37 {dimension_numbers = #tpu.dot_dimension_numbers<[1], [0], [0], [1], [0, 0, 1, 1], [], []>} : vector<8x128xbf16>, vector<128x128xbf16>, vector<8x128xf32> -> vector<8x128xf32>
    %43 = arith.subf %38, %39 : vector<8x128xf32>
    %44 = vector.broadcast %35 : vector<1x128xf32> to vector<8x128xf32>
    %45 = arith.addf %44, %43 : vector<8x128xf32>
    %46 = arith.subf %42, %38 : vector<8x128xf32>
    %47 = arith.subf %46, %39 : vector<8x128xf32>
    %48 = vector.broadcast %37 : vector<1x128xf32> to vector<8x128xf32>
    %49 = arith.addf %48, %47 : vector<8x128xf32>
    %cst_38 = arith.constant 0.000000e+00 : f32
    %50 = vector.broadcast %cst_38 : f32 to vector<8x128xf32>
    %51 = arith.maximumf %45, %50 : vector<8x128xf32>
    %52 = arith.truncf %51 : vector<8x128xf32> to vector<8x128xbf16>
    %c0_39 = arith.constant 0 : index
    %c0_40 = arith.constant 0 : index
    %53 = vector.load %arg17[%c0_39, %c0_40] : memref<8x128xbf16, #tpu.memory_space<vmem>>, vector<8x128xbf16>
    tpu.vector_store %arg17[%c0_39, %c0_40], %52 {strides = array<i32>} : memref<8x128xbf16, #tpu.memory_space<vmem>>, vector<8x128xbf16>,
    %cst_41 = arith.constant 0.000000e+00 : f32
    %54 = vector.broadcast %cst_41 : f32 to vector<8x128xf32>
    %55 = arith.maximumf %49, %54 : vector<8x128xf32>
    %56 = arith.truncf %55 : vector<8x128xf32> to vector<8x128xbf16>
    %c0_42 = arith.constant 0 : index
    %c0_43 = arith.constant 0 : index
    %57 = vector.load %arg18[%c0_42, %c0_43] : memref<8x128xbf16, #tpu.memory_space<vmem>>, vector<8x128xbf16>
    tpu.vector_store %arg18[%c0_42, %c0_43], %56 {strides = array<i32>} : memref<8x128xbf16, #tpu.memory_space<vmem>>, vector<8x128xbf16>,
    %c0_44 = arith.constant 0 : index
    %c0_45 = arith.constant 0 : index
    %58 = vector.load %arg17[%c0_44, %c0_45] : memref<8x128xbf16, #tpu.memory_space<vmem>>, vector<8x128xbf16>
    %c0_46 = arith.constant 0 : index
    %c0_47 = arith.constant 0 : index
    %59 = vector.load %arg18[%c0_46, %c0_47] : memref<8x128xbf16, #tpu.memory_space<vmem>>, vector<8x128xbf16>
    %c1 = arith.constant 1 : index
    %c0_48 = arith.constant 0 : index
    %c0_49 = arith.constant 0 : index
    %60 = vector.load %arg5[%c1, %c0_48, %c0_49] : memref<4x128x128xbf16, #tpu.memory_space<vmem>>, vector<1x128x128xbf16>
    %61 = vector.shape_cast %60 : vector<1x128x128xbf16> to vector<128x128xbf16>
    %c1_50 = arith.constant 1 : index
    %c0_51 = arith.constant 0 : index
    %c0_52 = arith.constant 0 : index
    %62 = vector.load %arg6[%c1_50, %c0_51, %c0_52] : memref<4x128x128xbf16, #tpu.memory_space<vmem>>, vector<1x128x128xbf16>
    %63 = vector.shape_cast %62 : vector<1x128x128xbf16> to vector<128x128xbf16>
    %c1_53 = arith.constant 1 : index
    %c0_54 = arith.constant 0 : index
    %c0_55 = arith.constant 0 : index
    %64 = vector.load %arg11[%c1_53, %c0_54, %c0_55] : memref<4x1x128xf32, #tpu.memory_space<vmem>>, vector<1x1x128xf32>
    %65 = vector.shape_cast %64 : vector<1x1x128xf32> to vector<1x128xf32>
    %c1_56 = arith.constant 1 : index
    %c0_57 = arith.constant 0 : index
    %c0_58 = arith.constant 0 : index
    %66 = vector.load %arg12[%c1_56, %c0_57, %c0_58] : memref<4x1x128xf32, #tpu.memory_space<vmem>>, vector<1x1x128xf32>
    %67 = vector.shape_cast %66 : vector<1x1x128xf32> to vector<1x128xf32>
    %cst_59 = arith.constant dense<0.000000e+00> : vector<8x128xf32>
    %68 = tpu.matmul %58, %61, %cst_59 {dimension_numbers = #tpu.dot_dimension_numbers<[1], [0], [0], [1], [0, 0, 1, 1], [], []>} : vector<8x128xbf16>, vector<128x128xbf16>, vector<8x128xf32> -> vector<8x128xf32>
    %cst_60 = arith.constant dense<0.000000e+00> : vector<8x128xf32>
    %69 = tpu.matmul %59, %63, %cst_60 {dimension_numbers = #tpu.dot_dimension_numbers<[1], [0], [0], [1], [0, 0, 1, 1], [], []>} : vector<8x128xbf16>, vector<128x128xbf16>, vector<8x128xf32> -> vector<8x128xf32>
    %70 = arith.addf %58, %59 : vector<8x128xbf16>
    %71 = arith.addf %61, %63 : vector<128x128xbf16>
    %cst_61 = arith.constant dense<0.000000e+00> : vector<8x128xf32>
    %72 = tpu.matmul %70, %71, %cst_61 {dimension_numbers = #tpu.dot_dimension_numbers<[1], [0], [0], [1], [0, 0, 1, 1], [], []>} : vector<8x128xbf16>, vector<128x128xbf16>, vector<8x128xf32> -> vector<8x128xf32>
    %73 = arith.subf %68, %69 : vector<8x128xf32>
    %74 = vector.broadcast %65 : vector<1x128xf32> to vector<8x128xf32>
    %75 = arith.addf %74, %73 : vector<8x128xf32>
    %76 = arith.subf %72, %68 : vector<8x128xf32>
    %77 = arith.subf %76, %69 : vector<8x128xf32>
    %78 = vector.broadcast %67 : vector<1x128xf32> to vector<8x128xf32>
    %79 = arith.addf %78, %77 : vector<8x128xf32>
    %cst_62 = arith.constant 0.000000e+00 : f32
    %80 = vector.broadcast %cst_62 : f32 to vector<8x128xf32>
    %81 = arith.maximumf %75, %80 : vector<8x128xf32>
    %82 = arith.truncf %81 : vector<8x128xf32> to vector<8x128xbf16>
    %c0_63 = arith.constant 0 : index
    %c0_64 = arith.constant 0 : index
    %83 = vector.load %arg17[%c0_63, %c0_64] : memref<8x128xbf16, #tpu.memory_space<vmem>>, vector<8x128xbf16>
    tpu.vector_store %arg17[%c0_63, %c0_64], %82 {strides = array<i32>} : memref<8x128xbf16, #tpu.memory_space<vmem>>, vector<8x128xbf16>,
    %cst_65 = arith.constant 0.000000e+00 : f32
    %84 = vector.broadcast %cst_65 : f32 to vector<8x128xf32>
    %85 = arith.maximumf %79, %84 : vector<8x128xf32>
    %86 = arith.truncf %85 : vector<8x128xf32> to vector<8x128xbf16>
    %c0_66 = arith.constant 0 : index
    %c0_67 = arith.constant 0 : index
    %87 = vector.load %arg18[%c0_66, %c0_67] : memref<8x128xbf16, #tpu.memory_space<vmem>>, vector<8x128xbf16>
    tpu.vector_store %arg18[%c0_66, %c0_67], %86 {strides = array<i32>} : memref<8x128xbf16, #tpu.memory_space<vmem>>, vector<8x128xbf16>,
    %c0_68 = arith.constant 0 : index
    %c0_69 = arith.constant 0 : index
    %88 = vector.load %arg17[%c0_68, %c0_69] : memref<8x128xbf16, #tpu.memory_space<vmem>>, vector<8x128xbf16>
    %c0_70 = arith.constant 0 : index
    %c0_71 = arith.constant 0 : index
    %89 = vector.load %arg18[%c0_70, %c0_71] : memref<8x128xbf16, #tpu.memory_space<vmem>>, vector<8x128xbf16>
    %c2 = arith.constant 2 : index
    %c0_72 = arith.constant 0 : index
    %c0_73 = arith.constant 0 : index
    %90 = vector.load %arg5[%c2, %c0_72, %c0_73] : memref<4x128x128xbf16, #tpu.memory_space<vmem>>, vector<1x128x128xbf16>
    %91 = vector.shape_cast %90 : vector<1x128x128xbf16> to vector<128x128xbf16>
    %c2_74 = arith.constant 2 : index
    %c0_75 = arith.constant 0 : index
    %c0_76 = arith.constant 0 : index
    %92 = vector.load %arg6[%c2_74, %c0_75, %c0_76] : memref<4x128x128xbf16, #tpu.memory_space<vmem>>, vector<1x128x128xbf16>
    %93 = vector.shape_cast %92 : vector<1x128x128xbf16> to vector<128x128xbf16>
    %c2_77 = arith.constant 2 : index
    %c0_78 = arith.constant 0 : index
    %c0_79 = arith.constant 0 : index
    %94 = vector.load %arg11[%c2_77, %c0_78, %c0_79] : memref<4x1x128xf32, #tpu.memory_space<vmem>>, vector<1x1x128xf32>
    %95 = vector.shape_cast %94 : vector<1x1x128xf32> to vector<1x128xf32>
    %c2_80 = arith.constant 2 : index
    %c0_81 = arith.constant 0 : index
    %c0_82 = arith.constant 0 : index
    %96 = vector.load %arg12[%c2_80, %c0_81, %c0_82] : memref<4x1x128xf32, #tpu.memory_space<vmem>>, vector<1x1x128xf32>
    %97 = vector.shape_cast %96 : vector<1x1x128xf32> to vector<1x128xf32>
    %cst_83 = arith.constant dense<0.000000e+00> : vector<8x128xf32>
    %98 = tpu.matmul %88, %91, %cst_83 {dimension_numbers = #tpu.dot_dimension_numbers<[1], [0], [0], [1], [0, 0, 1, 1], [], []>} : vector<8x128xbf16>, vector<128x128xbf16>, vector<8x128xf32> -> vector<8x128xf32>
    %cst_84 = arith.constant dense<0.000000e+00> : vector<8x128xf32>
    %99 = tpu.matmul %89, %93, %cst_84 {dimension_numbers = #tpu.dot_dimension_numbers<[1], [0], [0], [1], [0, 0, 1, 1], [], []>} : vector<8x128xbf16>, vector<128x128xbf16>, vector<8x128xf32> -> vector<8x128xf32>
    %100 = arith.addf %88, %89 : vector<8x128xbf16>
    %101 = arith.addf %91, %93 : vector<128x128xbf16>
    %cst_85 = arith.constant dense<0.000000e+00> : vector<8x128xf32>
    %102 = tpu.matmul %100, %101, %cst_85 {dimension_numbers = #tpu.dot_dimension_numbers<[1], [0], [0], [1], [0, 0, 1, 1], [], []>} : vector<8x128xbf16>, vector<128x128xbf16>, vector<8x128xf32> -> vector<8x128xf32>
    %103 = arith.subf %98, %99 : vector<8x128xf32>
    %104 = vector.broadcast %95 : vector<1x128xf32> to vector<8x128xf32>
    %105 = arith.addf %104, %103 : vector<8x128xf32>
    %106 = arith.subf %102, %98 : vector<8x128xf32>
    %107 = arith.subf %106, %99 : vector<8x128xf32>
    %108 = vector.broadcast %97 : vector<1x128xf32> to vector<8x128xf32>
    %109 = arith.addf %108, %107 : vector<8x128xf32>
    %cst_86 = arith.constant 0.000000e+00 : f32
    %110 = vector.broadcast %cst_86 : f32 to vector<8x128xf32>
    %111 = arith.maximumf %105, %110 : vector<8x128xf32>
    %112 = arith.truncf %111 : vector<8x128xf32> to vector<8x128xbf16>
    %c0_87 = arith.constant 0 : index
    %c0_88 = arith.constant 0 : index
    %113 = vector.load %arg17[%c0_87, %c0_88] : memref<8x128xbf16, #tpu.memory_space<vmem>>, vector<8x128xbf16>
    tpu.vector_store %arg17[%c0_87, %c0_88], %112 {strides = array<i32>} : memref<8x128xbf16, #tpu.memory_space<vmem>>, vector<8x128xbf16>,
    %cst_89 = arith.constant 0.000000e+00 : f32
    %114 = vector.broadcast %cst_89 : f32 to vector<8x128xf32>
    %115 = arith.maximumf %109, %114 : vector<8x128xf32>
    %116 = arith.truncf %115 : vector<8x128xf32> to vector<8x128xbf16>
    %c0_90 = arith.constant 0 : index
    %c0_91 = arith.constant 0 : index
    %117 = vector.load %arg18[%c0_90, %c0_91] : memref<8x128xbf16, #tpu.memory_space<vmem>>, vector<8x128xbf16>
    tpu.vector_store %arg18[%c0_90, %c0_91], %116 {strides = array<i32>} : memref<8x128xbf16, #tpu.memory_space<vmem>>, vector<8x128xbf16>,
    %c0_92 = arith.constant 0 : index
    %c0_93 = arith.constant 0 : index
    %118 = vector.load %arg17[%c0_92, %c0_93] : memref<8x128xbf16, #tpu.memory_space<vmem>>, vector<8x128xbf16>
    %c0_94 = arith.constant 0 : index
    %c0_95 = arith.constant 0 : index
    %119 = vector.load %arg18[%c0_94, %c0_95] : memref<8x128xbf16, #tpu.memory_space<vmem>>, vector<8x128xbf16>
    %c3 = arith.constant 3 : index
    %c0_96 = arith.constant 0 : index
    %c0_97 = arith.constant 0 : index
    %120 = vector.load %arg5[%c3, %c0_96, %c0_97] : memref<4x128x128xbf16, #tpu.memory_space<vmem>>, vector<1x128x128xbf16>
    %121 = vector.shape_cast %120 : vector<1x128x128xbf16> to vector<128x128xbf16>
    %c3_98 = arith.constant 3 : index
    %c0_99 = arith.constant 0 : index
    %c0_100 = arith.constant 0 : index
    %122 = vector.load %arg6[%c3_98, %c0_99, %c0_100] : memref<4x128x128xbf16, #tpu.memory_space<vmem>>, vector<1x128x128xbf16>
    %123 = vector.shape_cast %122 : vector<1x128x128xbf16> to vector<128x128xbf16>
    %c3_101 = arith.constant 3 : index
    %c0_102 = arith.constant 0 : index
    %c0_103 = arith.constant 0 : index
    %124 = vector.load %arg11[%c3_101, %c0_102, %c0_103] : memref<4x1x128xf32, #tpu.memory_space<vmem>>, vector<1x1x128xf32>
    %125 = vector.shape_cast %124 : vector<1x1x128xf32> to vector<1x128xf32>
    %c3_104 = arith.constant 3 : index
    %c0_105 = arith.constant 0 : index
    %c0_106 = arith.constant 0 : index
    %126 = vector.load %arg12[%c3_104, %c0_105, %c0_106] : memref<4x1x128xf32, #tpu.memory_space<vmem>>, vector<1x1x128xf32>
    %127 = vector.shape_cast %126 : vector<1x1x128xf32> to vector<1x128xf32>
    %cst_107 = arith.constant dense<0.000000e+00> : vector<8x128xf32>
    %128 = tpu.matmul %118, %121, %cst_107 {dimension_numbers = #tpu.dot_dimension_numbers<[1], [0], [0], [1], [0, 0, 1, 1], [], []>} : vector<8x128xbf16>, vector<128x128xbf16>, vector<8x128xf32> -> vector<8x128xf32>
    %cst_108 = arith.constant dense<0.000000e+00> : vector<8x128xf32>
    %129 = tpu.matmul %119, %123, %cst_108 {dimension_numbers = #tpu.dot_dimension_numbers<[1], [0], [0], [1], [0, 0, 1, 1], [], []>} : vector<8x128xbf16>, vector<128x128xbf16>, vector<8x128xf32> -> vector<8x128xf32>
    %130 = arith.addf %118, %119 : vector<8x128xbf16>
    %131 = arith.addf %121, %123 : vector<128x128xbf16>
    %cst_109 = arith.constant dense<0.000000e+00> : vector<8x128xf32>
    %132 = tpu.matmul %130, %131, %cst_109 {dimension_numbers = #tpu.dot_dimension_numbers<[1], [0], [0], [1], [0, 0, 1, 1], [], []>} : vector<8x128xbf16>, vector<128x128xbf16>, vector<8x128xf32> -> vector<8x128xf32>
    %133 = arith.subf %128, %129 : vector<8x128xf32>
    %134 = vector.broadcast %125 : vector<1x128xf32> to vector<8x128xf32>
    %135 = arith.addf %134, %133 : vector<8x128xf32>
    %136 = arith.subf %132, %128 : vector<8x128xf32>
    %137 = arith.subf %136, %129 : vector<8x128xf32>
    %138 = vector.broadcast %127 : vector<1x128xf32> to vector<8x128xf32>
    %139 = arith.addf %138, %137 : vector<8x128xf32>
    %cst_110 = arith.constant 0.000000e+00 : f32
    %140 = vector.broadcast %cst_110 : f32 to vector<8x128xf32>
    %141 = arith.maximumf %135, %140 : vector<8x128xf32>
    %142 = arith.truncf %141 : vector<8x128xf32> to vector<8x128xbf16>
    %c0_111 = arith.constant 0 : index
    %c0_112 = arith.constant 0 : index
    %143 = vector.load %arg17[%c0_111, %c0_112] : memref<8x128xbf16, #tpu.memory_space<vmem>>, vector<8x128xbf16>
    tpu.vector_store %arg17[%c0_111, %c0_112], %142 {strides = array<i32>} : memref<8x128xbf16, #tpu.memory_space<vmem>>, vector<8x128xbf16>,
    %cst_113 = arith.constant 0.000000e+00 : f32
    %144 = vector.broadcast %cst_113 : f32 to vector<8x128xf32>
    %145 = arith.maximumf %139, %144 : vector<8x128xf32>
    %146 = arith.truncf %145 : vector<8x128xf32> to vector<8x128xbf16>
    %c0_114 = arith.constant 0 : index
    %c0_115 = arith.constant 0 : index
    %147 = vector.load %arg18[%c0_114, %c0_115] : memref<8x128xbf16, #tpu.memory_space<vmem>>, vector<8x128xbf16>
    tpu.vector_store %arg18[%c0_114, %c0_115], %146 {strides = array<i32>} : memref<8x128xbf16, #tpu.memory_space<vmem>>, vector<8x128xbf16>,
    %c0_116 = arith.constant 0 : index
    %c0_117 = arith.constant 0 : index
    %148 = vector.load %arg17[%c0_116, %c0_117] : memref<8x128xbf16, #tpu.memory_space<vmem>>, vector<8x128xbf16>
    %c0_118 = arith.constant 0 : index
    %c0_119 = arith.constant 0 : index
    %149 = vector.load %arg18[%c0_118, %c0_119] : memref<8x128xbf16, #tpu.memory_space<vmem>>, vector<8x128xbf16>
    %c0_120 = arith.constant 0 : index
    %c0_121 = arith.constant 0 : index
    %150 = vector.load %arg7[%c0_120, %c0_121] : memref<128x128xbf16, #tpu.memory_space<vmem>>, vector<128x128xbf16>
    %c0_122 = arith.constant 0 : index
    %c0_123 = arith.constant 0 : index
    %151 = vector.load %arg8[%c0_122, %c0_123] : memref<128x128xbf16, #tpu.memory_space<vmem>>, vector<128x128xbf16>
    %c0_124 = arith.constant 0 : index
    %c0_125 = arith.constant 0 : index
    %152 = vector.load %arg13[%c0_124, %c0_125] : memref<1x128xf32, #tpu.memory_space<vmem>>, vector<1x128xf32>
    %c0_126 = arith.constant 0 : index
    %c0_127 = arith.constant 0 : index
    %153 = vector.load %arg14[%c0_126, %c0_127] : memref<1x128xf32, #tpu.memory_space<vmem>>, vector<1x128xf32>
    %cst_128 = arith.constant dense<0.000000e+00> : vector<8x128xf32>
    %154 = tpu.matmul %148, %150, %cst_128 {dimension_numbers = #tpu.dot_dimension_numbers<[1], [0], [0], [1], [0, 0, 1, 1], [], []>} : vector<8x128xbf16>, vector<128x128xbf16>, vector<8x128xf32> -> vector<8x128xf32>
    %cst_129 = arith.constant dense<0.000000e+00> : vector<8x128xf32>
    %155 = tpu.matmul %149, %151, %cst_129 {dimension_numbers = #tpu.dot_dimension_numbers<[1], [0], [0], [1], [0, 0, 1, 1], [], []>} : vector<8x128xbf16>, vector<128x128xbf16>, vector<8x128xf32> -> vector<8x128xf32>
    %156 = arith.addf %148, %149 : vector<8x128xbf16>
    %157 = arith.addf %150, %151 : vector<128x128xbf16>
    %cst_130 = arith.constant dense<0.000000e+00> : vector<8x128xf32>
    %158 = tpu.matmul %156, %157, %cst_130 {dimension_numbers = #tpu.dot_dimension_numbers<[1], [0], [0], [1], [0, 0, 1, 1], [], []>} : vector<8x128xbf16>, vector<128x128xbf16>, vector<8x128xf32> -> vector<8x128xf32>
    %159 = arith.subf %154, %155 : vector<8x128xf32>
    %160 = vector.broadcast %152 : vector<1x128xf32> to vector<8x128xf32>
    %161 = arith.addf %160, %159 : vector<8x128xf32>
    %162 = arith.subf %158, %154 : vector<8x128xf32>
    %163 = arith.subf %162, %155 : vector<8x128xf32>
    %164 = vector.broadcast %153 : vector<1x128xf32> to vector<8x128xf32>
    %165 = arith.addf %164, %163 : vector<8x128xf32>
    %c0_131 = arith.constant 0 : index
    %c0_132 = arith.constant 0 : index
    %166 = vector.load %arg15[%c0_131, %c0_132] : memref<8x128xf32, #tpu.memory_space<vmem>>, vector<8x128xf32>
    tpu.vector_store %arg15[%c0_131, %c0_132], %161 {strides = array<i32>} : memref<8x128xf32, #tpu.memory_space<vmem>>, vector<8x128xf32>,
    %c0_133 = arith.constant 0 : index
    %c0_134 = arith.constant 0 : index
    %167 = vector.load %arg16[%c0_133, %c0_134] : memref<8x128xf32, #tpu.memory_space<vmem>>, vector<8x128xf32>
    tpu.vector_store %arg16[%c0_133, %c0_134], %165 {strides = array<i32>} : memref<8x128xf32, #tpu.memory_space<vmem>>, vector<8x128xf32>,
    return
  }
  func.func @transform_0(%arg0: i32) -> (i32, i32) {
    %c0_i32 = arith.constant 0 : i32
    %c0_i32_0 = arith.constant 0 : i32
    return %arg0, %c0_i32 : i32, i32
  }
  func.func @transform_1(%arg0: i32) -> (i32, i32) {
    %c0_i32 = arith.constant 0 : i32
    %c0_i32_0 = arith.constant 0 : i32
    return %arg0, %c0_i32 : i32, i32
  }
  func.func @transform_2(%arg0: i32) -> (i32, i32) {
    %c0_i32 = arith.constant 0 : i32
    %c0_i32_0 = arith.constant 0 : i32
    %c0_i32_1 = arith.constant 0 : i32
    return %c0_i32, %c0_i32_0 : i32, i32
  }
  func.func @transform_3(%arg0: i32) -> (i32, i32) {
    %c0_i32 = arith.constant 0 : i32
    %c0_i32_0 = arith.constant 0 : i32
    %c0_i32_1 = arith.constant 0 : i32
    return %c0_i32, %c0_i32_0 : i32, i32
  }
  func.func @transform_4(%arg0: i32) -> (i32, i32, i32) {
    %c0_i32 = arith.constant 0 : i32
    %c0_i32_0 = arith.constant 0 : i32
    %c0_i32_1 = arith.constant 0 : i32
    %c0_i32_2 = arith.constant 0 : i32
    return %c0_i32, %c0_i32_0, %c0_i32_1 : i32, i32, i32
  }
  func.func @transform_5(%arg0: i32) -> (i32, i32, i32) {
    %c0_i32 = arith.constant 0 : i32
    %c0_i32_0 = arith.constant 0 : i32
    %c0_i32_1 = arith.constant 0 : i32
    %c0_i32_2 = arith.constant 0 : i32
    return %c0_i32, %c0_i32_0, %c0_i32_1 : i32, i32, i32
  }
  func.func @transform_6(%arg0: i32) -> (i32, i32) {
    %c0_i32 = arith.constant 0 : i32
    %c0_i32_0 = arith.constant 0 : i32
    %c0_i32_1 = arith.constant 0 : i32
    return %c0_i32, %c0_i32_0 : i32, i32
  }
  func.func @transform_7(%arg0: i32) -> (i32, i32) {
    %c0_i32 = arith.constant 0 : i32
    %c0_i32_0 = arith.constant 0 : i32
    %c0_i32_1 = arith.constant 0 : i32
    return %c0_i32, %c0_i32_0 : i32, i32
  }
  func.func @transform_8(%arg0: i32) -> (i32, i32) {
    %c0_i32 = arith.constant 0 : i32
    %c0_i32_0 = arith.constant 0 : i32
    %c0_i32_1 = arith.constant 0 : i32
    return %c0_i32, %c0_i32_0 : i32, i32
  }
  func.func @transform_9(%arg0: i32) -> (i32, i32) {
    %c0_i32 = arith.constant 0 : i32
    %c0_i32_0 = arith.constant 0 : i32
    %c0_i32_1 = arith.constant 0 : i32
    return %c0_i32, %c0_i32_0 : i32, i32
  }
  func.func @transform_10(%arg0: i32) -> (i32, i32, i32) {
    %c0_i32 = arith.constant 0 : i32
    %c0_i32_0 = arith.constant 0 : i32
    %c0_i32_1 = arith.constant 0 : i32
    %c0_i32_2 = arith.constant 0 : i32
    return %c0_i32, %c0_i32_0, %c0_i32_1 : i32, i32, i32
  }
  func.func @transform_11(%arg0: i32) -> (i32, i32, i32) {
    %c0_i32 = arith.constant 0 : i32
    %c0_i32_0 = arith.constant 0 : i32
    %c0_i32_1 = arith.constant 0 : i32
    %c0_i32_2 = arith.constant 0 : i32
    return %c0_i32, %c0_i32_0, %c0_i32_1 : i32, i32, i32
  }
  func.func @transform_12(%arg0: i32) -> (i32, i32) {
    %c0_i32 = arith.constant 0 : i32
    %c0_i32_0 = arith.constant 0 : i32
    %c0_i32_1 = arith.constant 0 : i32
    return %c0_i32, %c0_i32_0 : i32, i32
  }
  func.func @transform_13(%arg0: i32) -> (i32, i32) {
    %c0_i32 = arith.constant 0 : i32
    %c0_i32_0 = arith.constant 0 : i32
    %c0_i32_1 = arith.constant 0 : i32
    return %c0_i32, %c0_i32_0 : i32, i32
  }
  func.func @transform_14(%arg0: i32) -> (i32, i32) {
    %c0_i32 = arith.constant 0 : i32
    %c0_i32_0 = arith.constant 0 : i32
    return %arg0, %c0_i32 : i32, i32
  }
  func.func @transform_15(%arg0: i32) -> (i32, i32) {
    %c0_i32 = arith.constant 0 : i32
    %c0_i32_0 = arith.constant 0 : i32
    return %arg0, %c0_i32 : i32, i32
  }
}

</mosaic_0001>

<bundles_post_ra>
// kernel: tpu_custom_call.1
= control target key start
LH: loop header
LB: loop body
LE: loop exit
PB: predicated region body
PF: predicated region fallthrough
CT: control target
= control target key end

     0   :  { %21 = vsyncpa [#allocation5], 0  ;;  %s4005_s0 = inlined_call_operand.hbm [shape: f32[8,128], index: 0, kind: input, shape index: {}]   ;;  %s4006_s1 = inlined_call_operand.hbm [shape: f32[8,128], index: 1, kind: input, shape index: {}]   ;;  %s4007_s2 = inlined_call_operand.hbm [shape: bf16[128,128], index: 2, kind: input, shape index: {}]   ;;  %s4008_s3 = inlined_call_operand.hbm [shape: bf16[128,128], index: 3, kind: input, shape index: {}]   ;;  %s4009_s4 = inlined_call_operand.hbm [shape: bf16[4,128,128], index: 4, kind: input, shape index: {}]   ;;  %s4010_s5 = inlined_call_operand.hbm [shape: bf16[4,128,128], index: 5, kind: input, shape index: {}]   ;;  %s4011_s6 = inlined_call_operand.hbm [shape: bf16[128,128], index: 6, kind: input, shape index: {}]   ;;  %s4012_s7 = inlined_call_operand.hbm [shape: bf16[128,128], index: 7, kind: input, shape index: {}]   ;;  %s4013_s8 = inlined_call_operand.vmem [shape: f32[1,128], index: 8, kind: input, shape index: {}]   ;;  %s4014_s9 = inlined_call_operand.vmem [shape: f32[1,128], index: 9, kind: input, shape index: {}]   ;;  %s4015_s10 = inlined_call_operand.vmem [shape: f32[4,1,128], index: 10, kind: input, shape index: {}]   ;;  %s4016_s11 = inlined_call_operand.vmem [shape: f32[4,1,128], index: 11, kind: input, shape index: {}]   ;;  %s4017_s12 = inlined_call_operand.vmem [shape: f32[1,128], index: 12, kind: input, shape index: {}]   ;;  %s4018_s13 = inlined_call_operand.vmem [shape: f32[1,128], index: 13, kind: input, shape index: {}]   ;;  %s4019_s14 = inlined_call_operand.hbm [shape: f32[8,128], index: 14, kind: output, shape index: {0}]   ;;  %s4020_s15 = inlined_call_operand.hbm [shape: f32[8,128], index: 15, kind: output, shape index: {1}]  }
   0x1   :  { %22 = vsyncpa [#allocation8], 0 }
   0x2   :  { %23 = vsyncpa [#allocation11], 0 }
   0x3   :  { %24 = vsyncpa [#allocation14], 0 }
   0x4   :  { %25 = vsyncpa [#allocation17], 0 }
   0x5   :  { %26 = vsyncpa [#allocation6], 0 }
   0x6   :  { %27 = vsyncpa [#allocation20], 0  ;;  %s3248_s18 = smov [#allocation7]  }
   0x7   :  { %s44_s19 = sshll.u32 %s3248_s18, 4  ;;  %s45_s19 = int_to_ptr.vmem [resolvable:$true] %s44_s19 }
   0x8   :  { %s3042_s20 = scalar_lea.vmem %s45_s19, 128  ;;  %p3047_p1 = scmp.lt.s32.totalorder %s45_s19, %s45_s19 }
   0x9   :  { %p3043_p0 = scmp.ne.s32.totalorder %s45_s19, %s3042_s20  ;;  %p3048_p2 = scmp.lt.s32.totalorder %s3042_s20, %s3042_s20 }
   0xb   :  { %p3049_p3 = por %p3048_p2, %p3047_p1 }
   0xd   :  { %p3050_p4 = pnand %p3049_p3, %p3043_p0 }
   0xf   :  { %3053 = shalt.err (!%p3050_p4)
}
  0x10   :  { %47 = dma.hbm_to_vmem [thread:$0]  %s4006_s1, 128, %s45_s19, [#allocation8]  }
  0x11   :  { %s3249_s23 = smov [#allocation10]   ;;  %s3250_s25 = smov [#allocation13]  }
  0x12   :  { %s65_s24 = sshll.u32 %s3249_s23, 4  ;;  %s89_s26 = sshll.u32 %s3250_s25, 4  ;;  %s66_s24 = int_to_ptr.vmem [resolvable:$true] %s65_s24  ;;  %s90_s26 = int_to_ptr.vmem [resolvable:$true] %s89_s26 }
  0x13   :  { %s3062_s27 = scalar_lea.vmem %s66_s24, 1024  ;;  %p3067_p6 = scmp.lt.s32.totalorder %s66_s24, %s66_s24 }
  0x14   :  { %p3063_p5 = scmp.ne.s32.totalorder %s66_s24, %s3062_s27  ;;  %p3068_p7 = scmp.lt.s32.totalorder %s3062_s27, %s3062_s27 }
  0x16   :  { %p3069_p8 = por %p3068_p7, %p3067_p6 }
  0x18   :  { %p3070_p9 = pnand %p3069_p8, %p3063_p5 }
  0x1a   :  { %3073 = shalt.err (!%p3070_p9)
}
  0x1b   :  { %s3251_s28 = smov 64   ;;  %s3252_s29 = smov 4  }
  0x1c   :  { %71 = dma.hbm_to_vmem [thread:$0]  %s4008_s3, 1024, %s66_s24, [#allocation11], %s3251_s28, %s3251_s28, %s3252_s29  }
  0x1d   :  { %s3082_s1 = scalar_lea.vmem %s90_s26, 4096  ;;  %p3087_p11 = scmp.lt.s32.totalorder %s90_s26, %s90_s26 }
  0x1e   :  { %p3083_p10 = scmp.ne.s32.totalorder %s90_s26, %s3082_s1  ;;  %p3088_p12 = scmp.lt.s32.totalorder %s3082_s1, %s3082_s1 }
  0x20   :  { %p3089_p13 = por %p3088_p12, %p3087_p11 }
  0x22   :  { %p3090_p0 = pnand %p3089_p13, %p3083_p10 }
  0x24   :  { %3093 = shalt.err (!%p3090_p0)
}
  0x25   :  { %95 = dma.hbm_to_vmem [thread:$0]  %s4010_s5, 4096, %s90_s26, [#allocation14], %s3251_s28, %s3251_s28, %s3252_s29  }
  0x26   :  { %s3253_s19 = smov [#allocation4]   ;;  %s3254_s21 = smov [#allocation9]  }
  0x27   :  { %s34_s20 = sshll.u32 %s3253_s19, 4  ;;  %s53_s3 = sshll.u32 %s3254_s21, 4  ;;  %s35_s20 = int_to_ptr.vmem [resolvable:$true] %s34_s20  ;;  %s54_s3 = int_to_ptr.vmem [resolvable:$true] %s53_s3 }
  0x28   :  { %s3102_s22 = scalar_lea.vmem %s35_s20, 128  ;;  %p3107_p2 = scmp.lt.s32.totalorder %s35_s20, %s35_s20 }
  0x29   :  { %p3103_p1 = scmp.ne.s32.totalorder %s35_s20, %s3102_s22  ;;  %p3108_p3 = scmp.lt.s32.totalorder %s3102_s22, %s3102_s22 }
  0x2b   :  { %p3109_p4 = por %p3108_p3, %p3107_p2 }
  0x2d   :  { %p3110_p5 = pnand %p3109_p4, %p3103_p1 }
  0x2f   :  { %3113 = shalt.err (!%p3110_p5)
}
  0x30   :  { %37 = dma.hbm_to_vmem [thread:$0]  %s4005_s0, 128, %s35_s20, [#allocation5]  }
  0x31   :  { %s3122_s25 = scalar_lea.vmem %s54_s3, 1024  ;;  %p3127_p7 = scmp.lt.s32.totalorder %s54_s3, %s54_s3 }
  0x32   :  { %p3123_p6 = scmp.ne.s32.totalorder %s54_s3, %s3122_s25  ;;  %p3128_p8 = scmp.lt.s32.totalorder %s3122_s25, %s3122_s25 }
  0x34   :  { %p3129_p9 = por %p3128_p8, %p3127_p7 }
  0x36   :  { %p3130_p10 = pnand %p3129_p9, %p3123_p6 }
  0x38   :  { %3133 = shalt.err (!%p3130_p10)
}
  0x39   :  { %59 = dma.hbm_to_vmem [thread:$0]  %s4007_s2, 1024, %s54_s3, [#allocation8], %s3251_s28, %s3251_s28, %s3252_s29  }
  0x3a   :  { %s3255_s27 = smov [#allocation12]   ;;  %s3256_s16 = smov [#allocation15]  }
  0x3b   :  { %s77_s30 = sshll.u32 %s3255_s27, 4  ;;  %s101_s0 = sshll.u32 %s3256_s16, 4  ;;  %s78_s30 = int_to_ptr.vmem [resolvable:$true] %s77_s30  ;;  %s102_s0 = int_to_ptr.vmem [resolvable:$true] %s101_s0 }
  0x3c   :  { %s3142_s1 = scalar_lea.vmem %s78_s30, 4096  ;;  %p3147_p12 = scmp.lt.s32.totalorder %s78_s30, %s78_s30 }
  0x3d   :  { %p3143_p11 = scmp.ne.s32.totalorder %s78_s30, %s3142_s1  ;;  %p3148_p13 = scmp.lt.s32.totalorder %s3142_s1, %s3142_s1 }
  0x3f   :  { %p3149_p0 = por %p3148_p13, %p3147_p12 }
  0x41   :  { %p3150_p1 = pnand %p3149_p0, %p3143_p11 }
  0x43   :  { %3153 = shalt.err (!%p3150_p1)
}
  0x44   :  { %83 = dma.hbm_to_vmem [thread:$0]  %s4009_s4, 4096, %s78_s30, [#allocation11], %s3251_s28, %s3251_s28, %s3252_s29  }
  0x45   :  { %s3162_s2 = scalar_lea.vmem %s102_s0, 1024  ;;  %p3167_p3 = scmp.lt.s32.totalorder %s102_s0, %s102_s0 }
  0x46   :  { %p3163_p2 = scmp.ne.s32.totalorder %s102_s0, %s3162_s2  ;;  %p3168_p4 = scmp.lt.s32.totalorder %s3162_s2, %s3162_s2 }
  0x48   :  { %p3169_p5 = por %p3168_p4, %p3167_p3 }
  0x4a   :  { %p3170_p6 = pnand %p3169_p5, %p3163_p2 }
  0x4c   :  { %3173 = shalt.err (!%p3170_p6)
}
  0x4d   :  { %107 = dma.hbm_to_vmem [thread:$0]  %s4011_s6, 1024, %s102_s0, [#allocation14], %s3251_s28, %s3251_s28, %s3252_s29  }
  0x4e   :  { %s3257_s21 = smov [#allocation16]  }
  0x4f   :  { %s113_s3 = sshll.u32 %s3257_s21, 4  ;;  %s114_s3 = int_to_ptr.vmem [resolvable:$true] %s113_s3 }
  0x50   :  { %s3182_s22 = scalar_lea.vmem %s114_s3, 1024  ;;  %p3187_p8 = scmp.lt.s32.totalorder %s114_s3, %s114_s3 }
  0x51   :  { %p3183_p7 = scmp.ne.s32.totalorder %s114_s3, %s3182_s22  ;;  %p3188_p9 = scmp.lt.s32.totalorder %s3182_s22, %s3182_s22 }
  0x53   :  { %p3189_p10 = por %p3188_p9, %p3187_p8 }
  0x55   :  { %p3190_p11 = pnand %p3189_p10, %p3183_p7 }
  0x57   :  { %3193 = shalt.err (!%p3190_p11)
}
  0x58   :  { %119 = dma.hbm_to_vmem [thread:$0]  %s4012_s7, 1024, %s114_s3, [#allocation17], %s3251_s28, %s3251_s28, %s3252_s29  }
  0x59   :  { %3234 = dma.done.wait [#allocation5], 128  }
  0x5a   :  { %3235 = vsyncadd [#allocation5], 4294967168 }
  0x5b   :  { %3236 = dma.done.wait [#allocation8], 1152  }
  0x5c   :  { %3237 = vsyncadd [#allocation8], 4294966144 }
  0x5d   :  { %3238 = dma.done.wait [#allocation11], 5120  }
  0x5e   :  { %3239 = vsyncadd [#allocation11], 4294962176 }
  0x5f   :  { %3240 = dma.done.wait [#allocation14], 5120  }
  0x60   :  { %3241 = vsyncadd [#allocation14], 4294962176 }
  0x61   :  { %3242 = dma.done.wait [#allocation17], 1024  }
  0x62   :  { %3243 = vsyncadd [#allocation17], 4294966272  ;;  %v3258_v0 = vmov 0.0   ;;  %vm3259_vm0 = vmmov 0   ;;  %v3390_v1 = vld [vmem:[#allocation9 + $0x38] sm:$0xf] }
  0x63   :  { %2564 = vmatprep.subr.bf16.mxu0 %v3258_v0  ;;  %2584 = vmatprep.subr.bf16.mxu1 %v3258_v0  ;;  %v3392_v2 = vld [vmem:[#allocation9 + $0x3c] sm:$0xf]  ;;  %v3394_v3 = vld [vmem:[#allocation10 + $0x38] sm:$0xf]  ;;  %v3400_v6 = vld [vmem:[#allocation9 + $0x30] sm:$0xf] }
  0x64   :  { %2580 = vmatprep.mubr.msk.bf16.mxu0 %vm3259_vm0, %v3258_v0  ;;  %2600 = vmatprep.mubr.msk.bf16.mxu1 %vm3259_vm0, %v3258_v0  ;;  %v2247_v4 = vcombine.low %v3390_v1, %v3392_v2  ;;  %v3398_v5 = vld [vmem:[#allocation10 + $0x3c] sm:$0xf]  ;;  %v3402_v7 = vld [vmem:[#allocation9 + $0x34] sm:$0xf]  ;;  %v3406_v9 = vld [vmem:[#allocation10 + $0x30] sm:$0xf]  ;;  %v386_v47 = vadd.bf16 %v3394_v3, %v3390_v1 }
  0x65   :  { %v2255_v8 = vcombine.low %v3394_v3, %v3398_v5  ;;  %v3408_v10 = vld [vmem:[#allocation10 + $0x34] sm:$0xf]  ;;  %v2246_v11 = vcombine.low %v3400_v6, %v3402_v7  ;;  %v3415_v13 = vld [vmem:[#allocation9 + $0x28] sm:$0xf]  ;;  %v3417_v14 = vld [vmem:[#allocation9 + $0x2c] sm:$0xf]  ;;  %v387_v48 = vadd.bf16 %v3398_v5, %v3392_v2  ;;  %v384_v57 = vadd.bf16 %v3406_v9, %v3400_v6 }
  0x66   :  { %2565 = vmatpush3.bf16.msra.mxu0 %v2247_v4  ;;  %v2254_v12 = vcombine.low %v3406_v9, %v3408_v10  ;;  %v3420_v15 = vld [vmem:[#allocation10 + $0x28] sm:$0xf]  ;;  %v3422_v16 = vld [vmem:[#allocation10 + $0x2c] sm:$0xf]  ;;  %v2245_v17 = vcombine.low %v3415_v13, %v3417_v14  ;;  %v3429_v19 = vld [vmem:[#allocation9 + $0x20] sm:$0xf]  ;;  %v385_v58 = vadd.bf16 %v3408_v10, %v3402_v7 }
  0x67   :  { %2585 = vmatpush3.bf16.msra.mxu1 %v2255_v8  ;;  %2566 = vmatprep.subr.bf16.mxu0 %v3258_v0  ;;  %v2253_v18 = vcombine.low %v3420_v15, %v3422_v16  ;;  %v3431_v20 = vld [vmem:[#allocation9 + $0x24] sm:$0xf]  ;;  %v3434_v21 = vld [vmem:[#allocation10 + $0x20] sm:$0xf]  ;;  %v3443_v25 = vld [vmem:[#allocation9 + $0x18] sm:$0xf]  ;;  %v2263_v56 = vcombine.low %v386_v47, %v387_v48  ;;  %v382_v63 = vadd.bf16 %v3420_v15, %v3415_v13 }
  0x68   :  { %2586 = vmatprep.subr.bf16.mxu1 %v3258_v0  ;;  %v3436_v22 = vld [vmem:[#allocation10 + $0x24] sm:$0xf]  ;;  %v2244_v23 = vcombine.low %v3429_v19, %v3431_v20  ;;  %v3445_v26 = vld [vmem:[#allocation9 + $0x1c] sm:$0xf]  ;;  %v3448_v27 = vld [vmem:[#allocation10 + $0x18] sm:$0xf]  ;;  %v383_v1 = vadd.bf16 %v3422_v16, %v3417_v14  ;;  %v2262_v2 = vcombine.low %v384_v57, %v385_v58  ;;  %v380_v6 = vadd.bf16 %v3434_v21, %v3429_v19 }
  0x69   :  { %v2252_v24 = vcombine.low %v3434_v21, %v3436_v22  ;;  %v3450_v28 = vld [vmem:[#allocation10 + $0x1c] sm:$0xf]  ;;  %v2243_v29 = vcombine.low %v3443_v25, %v3445_v26  ;;  %v3457_v31 = vld [vmem:[#allocation9 + $0x10] sm:$0xf]  ;;  %v3459_v32 = vld [vmem:[#allocation9 + $0x14] sm:$0xf]  ;;  %v381_v7 = vadd.bf16 %v3436_v22, %v3431_v20 }
  0x6a   :  { %2567 = vmatpush3.bf16.msra.mxu0 %v2246_v11  ;;  %v2251_v30 = vcombine.low %v3448_v27, %v3450_v28  ;;  %v3462_v33 = vld [vmem:[#allocation10 + $0x10] sm:$0xf]  ;;  %v3464_v34 = vld [vmem:[#allocation10 + $0x14] sm:$0xf]  ;;  %v2242_v35 = vcombine.low %v3457_v31, %v3459_v32  ;;  %v3471_v37 = vld [vmem:[#allocation9 + $0x8] sm:$0xf]  ;;  %v2261_v8 = vcombine.low %v382_v63, %v383_v1  ;;  %v379_v13 = vadd.bf16 %v3450_v28, %v3445_v26 }
  0x6b   :  { %2587 = vmatpush3.bf16.msra.mxu1 %v2254_v12  ;;  %2568 = vmatprep.subr.bf16.mxu0 %v3258_v0  ;;  %v2250_v36 = vcombine.low %v3462_v33, %v3464_v34  ;;  %v3473_v38 = vld [vmem:[#allocation9 + $0xc] sm:$0xf]  ;;  %v3476_v39 = vld [vmem:[#allocation10 + $0x8] sm:$0xf]  ;;  %v3485_v43 = vld [vmem:[#allocation9] sm:$0xf]  ;;  %v378_v12 = vadd.bf16 %v3448_v27, %v3443_v25  ;;  %v2260_v14 = vcombine.low %v380_v6, %v381_v7 }
  0x6c   :  { %2588 = vmatprep.subr.bf16.mxu1 %v3258_v0  ;;  %v3478_v40 = vld [vmem:[#allocation10 + $0xc] sm:$0xf]  ;;  %v2241_v41 = vcombine.low %v3471_v37, %v3473_v38  ;;  %v3487_v44 = vld [vmem:[#allocation9 + $0x4] sm:$0xf]  ;;  %v3490_v45 = vld [vmem:[#allocation10] sm:$0xf]  ;;  %v376_v16 = vadd.bf16 %v3462_v33, %v3457_v31  ;;  %v374_v19 = vadd.bf16 %v3476_v39, %v3471_v37 }
  0x6d   :  { %v2249_v42 = vcombine.low %v3476_v39, %v3478_v40  ;;  %v3492_v46 = vld [vmem:[#allocation10 + $0x4] sm:$0xf]  ;;  %v2240_v49 = vcombine.low %v3485_v43, %v3487_v44  ;;  %v157_v50 = vld [vmem:[#allocation4] sm:$0xff]  ;;  %v159_v52 = vld [vmem:[#allocation7] sm:$0xff]  ;;  %v375_v20 = vadd.bf16 %v3478_v40, %v3473_v38  ;;  %v372_v22 = vadd.bf16 %v3490_v45, %v3485_v43  ;;  %s3260_s21 = smov [#allocation18]   ;;  %s3261_s23 = smov [#allocation19]  }
  0x6e   :  { %2569 = vmatpush3.bf16.msra.mxu0 %v2245_v17  ;;  %v2248_v51 = vcombine.low %v3490_v45, %v3492_v46  ;;  %v3504_v53 = vpack.c.bf16 %v157_v50, %v157_v50  ;;  %v3506_v54 = vld [vmem:[#allocation12 + $0x38] sm:$0xf]  ;;  %v3508_v55 = vld [vmem:[#allocation12 + $0x3c] sm:$0xf]  ;;  %v160_v59 = vpack.c.bf16 %v159_v52, %v159_v52  ;;  %v3519_v61 = vld [vmem:[#allocation12 + $0x30] sm:$0xf]  ;;  %v377_v17 = vadd.bf16 %v3464_v34, %v3459_v32 }
  0x6f   :  { %2589 = vmatpush3.bf16.msra.mxu1 %v2253_v18  ;;  %2570 = vmatprep.subr.bf16.mxu0 %v3258_v0  ;;  %v2273_v60 = vcombine.low %v3506_v54, %v3508_v55  ;;  %v3521_v62 = vld [vmem:[#allocation12 + $0x34] sm:$0xf]  ;;  %v3535_v4 = vld [vmem:[#allocation12 + $0x28] sm:$0xf]  ;;  %v3537_v5 = vld [vmem:[#allocation12 + $0x2c] sm:$0xf]  ;;  %v2259_v18 = vcombine.low %v378_v12, %v379_v13 }
  0x70   :  { %2590 = vmatprep.subr.bf16.mxu1 %v3258_v0  ;;  %v2272_v3 = vcombine.low %v3519_v61, %v3521_v62  ;;  %v2271_v9 = vcombine.low %v3535_v4, %v3537_v5  ;;  %v3547_v10 = vld [vmem:[#allocation12 + $0x20] sm:$0xf]  ;;  %v3549_v11 = vld [vmem:[#allocation12 + $0x24] sm:$0xf]  ;;  %v2258_v21 = vcombine.low %v376_v16, %v377_v17  ;;  %v371_v26 = vadd.bf16 %v160_v59, %v3504_v53  ;;  %v507_v27 = vld [vmem:[#allocation12 + $0x18] sm:$0xf] }
  0x71   :  { %v2270_v15 = vcombine.low %v3547_v10, %v3549_v11  ;;  %v508_v28 = vld [vmem:[#allocation12 + $0x1c] sm:$0xf]  ;;  %v506_v31 = vld [vmem:[#allocation12 + $0x14] sm:$0xf]  ;;  %v3582_v33 = vld [vmem:[#allocation12 + $0x8] sm:$0xf] }
  0x72   :  { %2571 = vmatpush3.bf16.msra.mxu0 %v2244_v23  ;;  %v373_v23 = vadd.bf16 %v3492_v46, %v3487_v44  ;;  %v3584_v34 = vld [vmem:[#allocation12 + $0xc] sm:$0xf]  ;;  %v3590_v37 = vld [vmem:[#allocation12 + $0x4] sm:$0xf]  ;;  %v531_v39 = vld [vmem:[#allocation13 + $0x38] sm:$0xf] }
  0x73   :  { %2591 = vmatpush3.bf16.msra.mxu1 %v2252_v24  ;;  %2572 = vmatprep.subr.bf16.mxu0 %v3258_v0  ;;  %v2257_v24 = vcombine.low %v374_v19, %v375_v20  ;;  %v532_v40 = vld [vmem:[#allocation13 + $0x3c] sm:$0xf]  ;;  %v529_v44 = vld [vmem:[#allocation13 + $0x30] sm:$0xf]  ;;  %v530_v45 = vld [vmem:[#allocation13 + $0x34] sm:$0xf] }
  0x74   :  { %2592 = vmatprep.subr.bf16.mxu1 %v3258_v0  ;;  %v2256_v25 = vcombine.low %v372_v22, %v373_v23  ;;  %v727_v43 = vadd.bf16 %v532_v40, %v3508_v55  ;;  %v724_v46 = vadd.bf16 %v529_v44, %v3519_v61  ;;  %v725_v47 = vadd.bf16 %v530_v45, %v3521_v62  ;;  %v528_v52 = vld [vmem:[#allocation13 + $0x2c] sm:$0xf]  ;;  %v525_v57 = vld [vmem:[#allocation13 + $0x20] sm:$0xf]  ;;  %v526_v58 = vld [vmem:[#allocation13 + $0x24] sm:$0xf] }
  0x75   :  { %v721_v61 = vadd.bf16 %v526_v58, %v3549_v11  ;;  %v523_v63 = vld [vmem:[#allocation13 + $0x18] sm:$0xf]  ;;  %v524_v1 = vld [vmem:[#allocation13 + $0x1c] sm:$0xf]  ;;  %v521_v6 = vld [vmem:[#allocation13 + $0x10] sm:$0xf] }
  0x76   :  { %2573 = vmatpush3.bf16.msra.mxu0 %v2243_v29  ;;  %v2269_v29 = vcombine.low %v507_v27, %v508_v28  ;;  %v3603_v50 = vcombine.low %v724_v46, %v725_v47  ;;  %v522_v7 = vld [vmem:[#allocation13 + $0x14] sm:$0xf]  ;;  %v519_v12 = vld [vmem:[#allocation13 + $0x8] sm:$0xf]  ;;  %v520_v13 = vld [vmem:[#allocation13 + $0xc] sm:$0xf] }
  0x77   :  { %2593 = vmatpush3.bf16.msra.mxu1 %v2251_v30  ;;  %2574 = vmatprep.subr.bf16.mxu0 %v3258_v0  ;;  %v505_v30 = vld [vmem:[#allocation12 + $0x10] sm:$0xf]  ;;  %v715_v16 = vadd.bf16 %v520_v13, %v3584_v34  ;;  %v517_v17 = vld [vmem:[#allocation13] sm:$0xf]  ;;  %s2213_s3 = sshll.u32 %s3260_s21, 4  ;;  %s2223_s6 = sshll.u32 %s3261_s23, 4  ;;  %s2214_s3 = int_to_ptr.vmem [resolvable:$true] %s2213_s3  ;;  %s2224_s6 = int_to_ptr.vmem [resolvable:$true] %s2223_s6 }
  0x78   :  { %2594 = vmatprep.subr.bf16.mxu1 %v3258_v0  ;;  %v2268_v32 = vcombine.low %v505_v30, %v506_v31  ;;  %p3199_p13 = scmp.lt.s32.totalorder %s2214_s3, %s2214_s3 }
  0x7a   :  { %2575 = vmatpush3.bf16.msra.mxu0 %v2242_v35  ;;  %v2267_v35 = vcombine.low %v3582_v33, %v3584_v34 }
  0x7b   :  { %2595 = vmatpush3.bf16.msra.mxu1 %v2250_v36  ;;  %2576 = vmatprep.subr.bf16.mxu0 %v3258_v0  ;;  %v3588_v36 = vld [vmem:[#allocation12] sm:$0xf] }
  0x7c   :  { %2596 = vmatprep.subr.bf16.mxu1 %v3258_v0  ;;  %v2266_v38 = vcombine.low %v3588_v36, %v3590_v37  ;;  %v712_v19 = vadd.bf16 %v517_v17, %v3588_v36 }
  0x7e   :  { %2577 = vmatpush3.bf16.msra.mxu0 %v2241_v41  ;;  %v2281_v41 = vcombine.low %v531_v39, %v532_v40  ;;  %v2265_v40 = vld [vmem:[%s4014_s9] ss:$0 sm:$0xff] }
  0x7f   :  { %2597 = vmatpush3.bf16.msra.mxu1 %v2249_v42  ;;  %2578 = vmatprep.subr.bf16.mxu0 %v3258_v0  ;;  %v726_v42 = vadd.bf16 %v531_v39, %v3506_v54  ;;  %v723_v54 = vadd.bf16 %v528_v52, %v3537_v5 }
  0x80   :  { %2598 = vmatprep.subr.bf16.mxu1 %v3258_v0 }
  0x81   :  { %v3600_v48 = vcombine.low %v726_v42, %v727_v43 }
  0x82   :  { %2579 = vmatpush3.bf16.msra.mxu0 %v2240_v49  ;;  %v2280_v49 = vcombine.low %v529_v44, %v530_v45 }
  0x83   :  { %2599 = vmatpush3.bf16.msra.mxu1 %v2248_v51  ;;  %2604 = vmatprep.subr.bf16.mxu0 %v3258_v0  ;;  %v527_v51 = vld [vmem:[#allocation13 + $0x28] sm:$0xf] }
  0x84   :  { %2624 = vmatprep.subr.bf16.mxu1 %v3258_v0  ;;  %v2279_v55 = vcombine.low %v527_v51, %v528_v52  ;;  %v3649_v52 = vld [vmem:[#allocation12 + $0x70] sm:$0xf] }
  0x85   :  { %2581 = vmatmul.mubr.bf16.vlgmr.msra.gmra.mxu0 %v3504_v53  ;;  %v722_v53 = vadd.bf16 %v527_v51, %v3535_v4  ;;  %v719_v4 = vadd.bf16 %v524_v1, %v508_v28  ;;  %v3647_v51 = vld [vmem:[#allocation12 + $0x7c] sm:$0xf] }
  0x86   :  { %2601 = vmatmul.mubr.bf16.vlgmr.msra.gmra.mxu1 %v160_v59  ;;  %2605 = vmatpush3.bf16.msra.mxu0 %v2263_v56  ;;  %v2278_v59 = vcombine.low %v525_v57, %v526_v58  ;;  %v3661_v58 = vld [vmem:[#allocation13 + $0x70] sm:$0xf] }
  0x87   :  { %2606 = vmatprep.subr.bf16.mxu0 %v3258_v0  ;;  %2620 = vmatprep.mubr.msk.bf16.mxu0 %vm3259_vm0, %v3258_v0  ;;  %v3608_v56 = vcombine.low %v722_v53, %v723_v54  ;;  %v3653_v54 = vld [vmem:[#allocation12 + $0x74] sm:$0xf] }
  0x88   :  { %2625 = vmatpush3.bf16.msra.mxu1 %v2273_v60  ;;  %2640 = vmatprep.mubr.msk.bf16.mxu1 %vm3259_vm0, %v3258_v0  ;;  %v720_v60 = vadd.bf16 %v525_v57, %v3547_v10  ;;  %v717_v10 = vadd.bf16 %v522_v7, %v506_v31 }
  0x89   :  { %2626 = vmatprep.subr.bf16.mxu1 %v3258_v0 }
  0x8a   :  { %2607 = vmatpush3.bf16.msra.mxu0 %v2262_v2  ;;  %v2286_v62 = vcombine.low %v720_v60, %v721_v61  ;;  %v2277_v2 = vcombine.low %v523_v63, %v524_v1  ;;  %v3665_v60 = vld [vmem:[#allocation13 + $0x74] sm:$0xf]  ;;  %v3668_v61 = vld [vmem:[#allocation12 + $0x68] sm:$0xf] }
  0x8b   :  { %2608 = vmatprep.subr.bf16.mxu0 %v3258_v0  ;;  %v3675_v1 = vld [vmem:[#allocation13 + $0x68] sm:$0xf] }
  0x8c   :  { %2627 = vmatpush3.bf16.msra.mxu1 %v2272_v3  ;;  %v718_v3 = vadd.bf16 %v523_v63, %v507_v27  ;;  %v2308_v63 = vcombine.low %v3661_v58, %v3665_v60 }
  0x8d   :  { %2628 = vmatprep.subr.bf16.mxu1 %v3258_v0 }
  0x8e   :  { %2609 = vmatpush3.bf16.msra.mxu0 %v2261_v8  ;;  %v2285_v5 = vcombine.low %v718_v3, %v719_v4  ;;  %v2276_v8 = vcombine.low %v521_v6, %v522_v7  ;;  %v3682_v4 = vld [vmem:[#allocation12 + $0x60] sm:$0xf] }
  0x8f   :  { %2610 = vmatprep.subr.bf16.mxu0 %v3258_v0 }
  0x90   :  { %2629 = vmatpush3.bf16.msra.mxu1 %v2271_v9  ;;  %v716_v9 = vadd.bf16 %v521_v6, %v505_v30 }
  0x91   :  { %2630 = vmatprep.subr.bf16.mxu1 %v3258_v0 }
  0x92   :  { %2611 = vmatpush3.bf16.msra.mxu0 %v2260_v14  ;;  %v2284_v11 = vcombine.low %v716_v9, %v717_v10  ;;  %v2275_v14 = vcombine.low %v519_v12, %v520_v13  ;;  %v849_v9 = vld [vmem:[#allocation12 + $0x5c] sm:$0xf] }
  0x93   :  { %2612 = vmatprep.subr.bf16.mxu0 %v3258_v0 }
  0x94   :  { %2631 = vmatpush3.bf16.msra.mxu1 %v2270_v15  ;;  %v714_v15 = vadd.bf16 %v519_v12, %v3582_v33  ;;  %v868_v12 = vld [vmem:[#allocation13 + $0x64] sm:$0xf] }
  0x95   :  { %2632 = vmatprep.subr.bf16.mxu1 %v3258_v0 }
  0x96   :  { %2613 = vmatpush3.bf16.msra.mxu0 %v2259_v18  ;;  %v518_v18 = vld [vmem:[#allocation13 + $0x4] sm:$0xf] }
  0x97   :  { %2614 = vmatprep.subr.bf16.mxu0 %v3258_v0  ;;  %v713_v20 = vadd.bf16 %v518_v18, %v3590_v37  ;;  %v2274_v22 = vcombine.low %v517_v17, %v518_v18  ;;  %v865_v17 = vld [vmem:[#allocation13 + $0x58] sm:$0xf]  ;;  %v866_v18 = vld [vmem:[#allocation13 + $0x5c] sm:$0xf] }
  0x98   :  { %2633 = vmatpush3.bf16.msra.mxu1 %v2269_v29 }
  0x99   :  { %2634 = vmatprep.subr.bf16.mxu1 %v3258_v0  ;;  %v2282_v23 = vcombine.low %v712_v19, %v713_v20  ;;  %v2305_v19 = vcombine.low %v865_v17, %v866_v18  ;;  %v844_v20 = vld [vmem:[#allocation12 + $0x48] sm:$0xf] }
  0x9a   :  { %2615 = vmatpush3.bf16.msra.mxu0 %v2258_v21  ;;  %v2283_v21 = vcombine.low %v714_v15, %v715_v16  ;;  %v847_v15 = vld [vmem:[#allocation12 + $0x54] sm:$0xf] }
  0x9b   :  { %2616 = vmatprep.subr.bf16.mxu0 %v3258_v0 }
  0x9c   :  { %2635 = vmatpush3.bf16.msra.mxu1 %v2268_v32 }
  0x9d   :  { %2636 = vmatprep.subr.bf16.mxu1 %v3258_v0 }
  0x9e   :  { %2617 = vmatpush3.bf16.msra.mxu0 %v2257_v24 }
  0x9f   :  { %2618 = vmatprep.subr.bf16.mxu0 %v3258_v0 }
  0xa0   :  { %2637 = vmatpush3.bf16.msra.mxu1 %v2267_v35 }
  0xa1   :  { %2638 = vmatprep.subr.bf16.mxu1 %v3258_v0 }
  0xa2   :  { %2619 = vmatpush3.bf16.msra.mxu0 %v2256_v25  ;;  %v2264_v25 = vld [vmem:[%s4013_s8] ss:$0 sm:$0xff] }
  0xa3   :  { %2644 = vmatprep.subr.bf16.mxu0 %v3258_v0 }
  0xa4   :  { %2639 = vmatpush3.bf16.msra.mxu1 %v2266_v38 }
  0xa5   :  { %2621 = vmatmul.mubr.bf16.vlgmr.msra.gmra.mxu0 %v371_v26  ;;  %2664 = vmatprep.subr.bf16.mxu1 %v3258_v0 }
  0xa6   :  { %2660 = vmatprep.mubr.msk.bf16.mxu0 %vm3259_vm0, %v3258_v0  ;;  %2645 = vmatpush3.bf16.msra.mxu0 %v2281_v41 }
  0xa7   :  { %2646 = vmatprep.subr.bf16.mxu0 %v3258_v0 }
  0xaa   :  { %2647 = vmatpush3.bf16.msra.mxu0 %v2280_v49 }
  0xab   :  { %2648 = vmatprep.subr.bf16.mxu0 %v3258_v0 }
  0xae   :  { %2649 = vmatpush3.bf16.msra.mxu0 %v2279_v55  ;;  %v3655_v55 = vld [vmem:[#allocation13 + $0x78] sm:$0xf] }
  0xaf   :  { %2650 = vmatprep.subr.bf16.mxu0 %v3258_v0 }
  0xb2   :  { %2651 = vmatpush3.bf16.msra.mxu0 %v2278_v59  ;;  %v2300_v59 = vcombine.low %v3649_v52, %v3653_v54 }
  0xb3   :  { %2652 = vmatprep.subr.bf16.mxu0 %v3258_v0 }
  0xb6   :  { %2653 = vmatpush3.bf16.msra.mxu0 %v2277_v2  ;;  %v3677_v2 = vld [vmem:[#allocation13 + $0x6c] sm:$0xf] }
  0xb7   :  { %2654 = vmatprep.subr.bf16.mxu0 %v3258_v0  ;;  %v2307_v6 = vcombine.low %v3675_v1, %v3677_v2 }
  0xba   :  { %2655 = vmatpush3.bf16.msra.mxu0 %v2276_v8  ;;  %v848_v8 = vld [vmem:[#allocation12 + $0x58] sm:$0xf] }
  0xbb   :  { %2656 = vmatprep.subr.bf16.mxu0 %v3258_v0  ;;  %v2297_v10 = vcombine.low %v848_v8, %v849_v9 }
  0xbe   :  { %2657 = vmatpush3.bf16.msra.mxu0 %v2275_v14  ;;  %v846_v14 = vld [vmem:[#allocation12 + $0x50] sm:$0xf] }
  0xbf   :  { %2658 = vmatprep.subr.bf16.mxu0 %v3258_v0  ;;  %v2296_v16 = vcombine.low %v846_v14, %v847_v15 }
  0xc2   :  { %2659 = vmatpush3.bf16.msra.mxu0 %v2274_v22 }
  0xc3   :  { %2684 = vmatprep.subr.bf16.mxu0 %v3258_v0 }
 0x145   :  { %v277_v24 = vpop.f32.mrf.mxu0 }
 0x146   :  { %v365_v26 = vpop.f32.mrf.mxu1 }
 0x147   :  { %v476_v27 = vsub.f32 %v277_v24, %v365_v26  ;;  %v2582_v28 = vpop.f32.mrf.mxu0 }
 0x148   :  { %v2602_v29 = vpop.f32.mrf.mxu1 }
 0x149   :  { %v483_v30 = vadd.f32 %v2264_v25, %v476_v27  ;;  %v280_v31 = vpop.f32.mrf.mxu0  ;;  %v843_v27 = vld [vmem:[#allocation12 + $0x44] sm:$0xf]  ;;  %v861_v29 = vld [vmem:[#allocation13 + $0x48] sm:$0xf] }
 0x14a   :  { %v368_v32 = vpop.f32.mrf.mxu1 }
 0x14b   :  { %v493_v33 = vmax.f32 %v483_v30, 0.0  ;;  %v2583_v34 = vpop.f32.mrf.mxu0  ;;  %v862_v30 = vld [vmem:[#allocation13 + $0x4c] sm:$0xf] }
 0x14c   :  { %v2603_v35 = vpop.f32.mrf.mxu1  ;;  %v2303_v31 = vcombine.low %v861_v29, %v862_v30 }
 0x14d   :  { %v494_v36 = vpack.c.bf16 %v493_v33, %v493_v33  ;;  %v859_v35 = vld [vmem:[#allocation13 + $0x40] sm:$0xf] }
 0x14f   :  { %495 = vst [vmem:[#allocation2] sm:$0xf] %v494_v36  ;;  %v860_v36 = vld [vmem:[#allocation13 + $0x44] sm:$0xf] }
 0x156   :  { %v499_v37 = vld [vmem:[#allocation2] sm:$0xf] }
 0x157   :  { %2641 = vmatmul.mubr.bf16.vlgmr.msra.gmra.mxu1 %v499_v37 }
 0x158   :  { %2665 = vmatpush3.bf16.msra.mxu1 %v3600_v48  ;;  %2680 = vmatprep.mubr.msk.bf16.mxu1 %vm3259_vm0, %v3258_v0 }
 0x159   :  { %2666 = vmatprep.subr.bf16.mxu1 %v3258_v0 }
 0x15c   :  { %2667 = vmatpush3.bf16.msra.mxu1 %v3603_v50  ;;  %v3645_v50 = vld [vmem:[#allocation12 + $0x78] sm:$0xf] }
 0x15d   :  { %2668 = vmatprep.subr.bf16.mxu1 %v3258_v0  ;;  %v2301_v53 = vcombine.low %v3645_v50, %v3647_v51  ;;  %v1070_v32 = vadd.bf16 %v3655_v55, %v3645_v50 }
 0x160   :  { %2669 = vmatpush3.bf16.msra.mxu1 %v3608_v56  ;;  %v3657_v56 = vld [vmem:[#allocation13 + $0x7c] sm:$0xf] }
 0x161   :  { %2670 = vmatprep.subr.bf16.mxu1 %v3258_v0  ;;  %v2309_v57 = vcombine.low %v3655_v55, %v3657_v56  ;;  %v1071_v33 = vadd.bf16 %v3657_v56, %v3647_v51 }
 0x163   :  { %v2317_v34 = vcombine.low %v1070_v32, %v1071_v33  ;;  %v1195_v32 = vld [vmem:[#allocation12 + $0xa4] sm:$0xf] }
 0x164   :  { %2671 = vmatpush3.bf16.msra.mxu1 %v2286_v62  ;;  %v3670_v62 = vld [vmem:[#allocation12 + $0x6c] sm:$0xf] }
 0x165   :  { %v470_v38 = vpop.f32.mrf.mxu0  ;;  %2672 = vmatprep.subr.bf16.mxu1 %v3258_v0  ;;  %v2299_v3 = vcombine.low %v3668_v61, %v3670_v62 }
 0x166   :  { %v484_v39 = vsub.f32 %v470_v38, %v277_v24  ;;  %v864_v24 = vld [vmem:[#allocation13 + $0x54] sm:$0xf]  ;;  %v1068_v38 = vadd.bf16 %v3661_v58, %v3649_v52 }
 0x167   :  { %v2622_v41 = vpop.f32.mrf.mxu0  ;;  %v1061_v51 = vadd.bf16 %v864_v24, %v847_v15 }
 0x168   :  { %v485_v42 = vsub.f32 %v484_v39, %v365_v26  ;;  %2673 = vmatpush3.bf16.msra.mxu1 %v2285_v5  ;;  %v3684_v5 = vld [vmem:[#allocation12 + $0x64] sm:$0xf]  ;;  %v842_v26 = vld [vmem:[#allocation12 + $0x40] sm:$0xf]  ;;  %v1069_v39 = vadd.bf16 %v3665_v60, %v3653_v54  ;;  %v1066_v41 = vadd.bf16 %v3675_v1, %v3668_v61 }
 0x169   :  { %v473_v43 = vpop.f32.mrf.mxu0  ;;  %2674 = vmatprep.subr.bf16.mxu1 %v3258_v0  ;;  %v2298_v7 = vcombine.low %v3682_v4, %v3684_v5  ;;  %v2294_v28 = vcombine.low %v842_v26, %v843_v27  ;;  %v1056_v56 = vadd.bf16 %v859_v35, %v842_v26 }
 0x16a   :  { %v492_v44 = vadd.f32 %v2265_v40, %v485_v42  ;;  %v2316_v40 = vcombine.low %v1068_v38, %v1069_v39  ;;  %v1067_v42 = vadd.bf16 %v3677_v2, %v3670_v62  ;;  %v1191_v38 = vld [vmem:[#allocation12 + $0x94] sm:$0xf] }
 0x16b   :  { %v2623_v45 = vpop.f32.mrf.mxu0 }
 0x16c   :  { %v496_v46 = vmax.f32 %v492_v44, 0.0  ;;  %2675 = vmatpush3.bf16.msra.mxu1 %v2284_v11  ;;  %v867_v11 = vld [vmem:[#allocation13 + $0x60] sm:$0xf]  ;;  %v2315_v43 = vcombine.low %v1066_v41, %v1067_v42  ;;  %v1065_v45 = vadd.bf16 %v868_v12, %v3684_v5  ;;  %v3766_v41 = vld [vmem:[#allocation12 + $0x8c] sm:$0xf] }
 0x16d   :  { %2676 = vmatprep.subr.bf16.mxu1 %v3258_v0  ;;  %v2306_v13 = vcombine.low %v867_v11, %v868_v12  ;;  %v1064_v44 = vadd.bf16 %v867_v11, %v3682_v4 }
 0x16e   :  { %v497_v47 = vpack.c.bf16 %v496_v46, %v496_v46 }
 0x16f   :  { %v2314_v46 = vcombine.low %v1064_v44, %v1065_v45  ;;  %v3772_v44 = vld [vmem:[#allocation12 + $0x84] sm:$0xf]  ;;  %v1217_v45 = vld [vmem:[#allocation13 + $0xb8] sm:$0xf] }
 0x170   :  { %498 = vst [vmem:[#allocation3] sm:$0xf] %v497_v47  ;;  %2677 = vmatpush3.bf16.msra.mxu1 %v2283_v21  ;;  %v845_v21 = vld [vmem:[#allocation12 + $0x4c] sm:$0xf]  ;;  %v1062_v47 = vadd.bf16 %v865_v17, %v848_v8 }
 0x171   :  { %2678 = vmatprep.subr.bf16.mxu1 %v3258_v0  ;;  %v2295_v22 = vcombine.low %v844_v20, %v845_v21  ;;  %v1059_v54 = vadd.bf16 %v862_v30, %v845_v21 }
 0x174   :  { %2679 = vmatpush3.bf16.msra.mxu1 %v2282_v23  ;;  %v863_v23 = vld [vmem:[#allocation13 + $0x50] sm:$0xf] }
 0x175   :  { %2704 = vmatprep.subr.bf16.mxu1 %v3258_v0  ;;  %v2304_v25 = vcombine.low %v863_v23, %v864_v24  ;;  %v1060_v50 = vadd.bf16 %v863_v23, %v846_v14  ;;  %v3734_v23 = vld [vmem:[#allocation12 + $0xb0] sm:$0xf]  ;;  %v3736_v24 = vld [vmem:[#allocation12 + $0xb4] sm:$0xf] }
 0x176   :  { %v2328_v26 = vcombine.low %v3734_v23, %v3736_v24 }
 0x177   :  { %v500_v48 = vld [vmem:[#allocation3] sm:$0xf]  ;;  %v2312_v52 = vcombine.low %v1060_v50, %v1061_v51 }
 0x178   :  { %2661 = vmatmul.mubr.bf16.vlgmr.msra.gmra.mxu0 %v500_v48  ;;  %v711_v49 = vadd.bf16 %v500_v48, %v499_v37  ;;  %v2302_v37 = vcombine.low %v859_v35, %v860_v36  ;;  %v1063_v48 = vadd.bf16 %v866_v18, %v849_v9  ;;  %v1193_v35 = vld [vmem:[#allocation12 + $0x9c] sm:$0xf] }
 0x179   :  { %2700 = vmatprep.mubr.msk.bf16.mxu0 %vm3259_vm0, %v3258_v0  ;;  %2685 = vmatpush3.bf16.msra.mxu0 %v2301_v53  ;;  %v1058_v53 = vadd.bf16 %v861_v29, %v844_v20  ;;  %v3727_v20 = vld [vmem:[#allocation12 + $0xbc] sm:$0xf] }
 0x17a   :  { %2681 = vmatmul.mubr.bf16.vlgmr.msra.gmra.mxu1 %v711_v49  ;;  %2686 = vmatprep.subr.bf16.mxu0 %v3258_v0  ;;  %v3717_v49 = vcombine.low %v1062_v47, %v1063_v48  ;;  %v1218_v47 = vld [vmem:[#allocation13 + $0xbc] sm:$0xf] }
 0x17b   :  { %2720 = vmatprep.mubr.msk.bf16.mxu1 %vm3259_vm0, %v3258_v0  ;;  %2705 = vmatpush3.bf16.msra.mxu1 %v2309_v57  ;;  %v2311_v55 = vcombine.low %v1058_v53, %v1059_v54  ;;  %v1057_v57 = vadd.bf16 %v860_v36, %v843_v27  ;;  %v3742_v27 = vld [vmem:[#allocation12 + $0xa8] sm:$0xf]  ;;  %v2337_v48 = vcombine.low %v1217_v45, %v1218_v47  ;;  %v1216_v53 = vld [vmem:[#allocation13 + $0xb4] sm:$0xf] }
 0x17c   :  { %2706 = vmatprep.subr.bf16.mxu1 %v3258_v0  ;;  %v1415_v50 = vadd.bf16 %v1218_v47, %v3727_v20  ;;  %v2319_v47 = vld [vmem:[%s4016_s11 + $0x1] ss:$0 sm:$0xff] }
 0x17d   :  { %2687 = vmatpush3.bf16.msra.mxu0 %v2300_v59  ;;  %v2310_v58 = vcombine.low %v1056_v56, %v1057_v57  ;;  %v1413_v56 = vadd.bf16 %v1216_v53, %v3736_v24 }
 0x17e   :  { %2688 = vmatprep.subr.bf16.mxu0 %v3258_v0 }
 0x17f   :  { %2707 = vmatpush3.bf16.msra.mxu1 %v2308_v63  ;;  %v2290_v63 = vld [vmem:[%s4015_s10] ss:$0 sm:$0xff] }
 0x180   :  { %2708 = vmatprep.subr.bf16.mxu1 %v3258_v0 }
 0x181   :  { %2689 = vmatpush3.bf16.msra.mxu0 %v2299_v3 }
 0x182   :  { %2690 = vmatprep.subr.bf16.mxu0 %v3258_v0 }
 0x183   :  { %2709 = vmatpush3.bf16.msra.mxu1 %v2307_v6 }
 0x184   :  { %2710 = vmatprep.subr.bf16.mxu1 %v3258_v0 }
 0x185   :  { %2691 = vmatpush3.bf16.msra.mxu0 %v2298_v7  ;;  %v2291_v7 = vld [vmem:[%s4016_s11] ss:$0 sm:$0xff] }
 0x186   :  { %2692 = vmatprep.subr.bf16.mxu0 %v3258_v0 }
 0x187   :  { %2711 = vmatpush3.bf16.msra.mxu1 %v2306_v13 }
 0x188   :  { %2712 = vmatprep.subr.bf16.mxu1 %v3258_v0 }
 0x189   :  { %2693 = vmatpush3.bf16.msra.mxu0 %v2297_v10 }
 0x18a   :  { %2694 = vmatprep.subr.bf16.mxu0 %v3258_v0 }
 0x18b   :  { %2713 = vmatpush3.bf16.msra.mxu1 %v2305_v19  ;;  %v3725_v19 = vld [vmem:[#allocation12 + $0xb8] sm:$0xf] }
 0x18c   :  { %2714 = vmatprep.subr.bf16.mxu1 %v3258_v0 }
 0x18d   :  { %2695 = vmatpush3.bf16.msra.mxu0 %v2296_v16 }
 0x18e   :  { %2696 = vmatprep.subr.bf16.mxu0 %v3258_v0 }
 0x18f   :  { %2715 = vmatpush3.bf16.msra.mxu1 %v2304_v25 }
 0x190   :  { %2716 = vmatprep.subr.bf16.mxu1 %v3258_v0 }
 0x191   :  { %2697 = vmatpush3.bf16.msra.mxu0 %v2295_v22  ;;  %v2329_v22 = vcombine.low %v3725_v19, %v3727_v20  ;;  %v1206_v20 = vld [vmem:[#allocation13 + $0x8c] sm:$0xf] }
 0x192   :  { %2698 = vmatprep.subr.bf16.mxu0 %v3258_v0 }
 0x193   :  { %2717 = vmatpush3.bf16.msra.mxu1 %v2303_v31  ;;  %v1194_v31 = vld [vmem:[#allocation12 + $0xa0] sm:$0xf] }
 0x194   :  { %2718 = vmatprep.subr.bf16.mxu1 %v3258_v0  ;;  %v2326_v33 = vcombine.low %v1194_v31, %v1195_v32 }
 0x195   :  { %2699 = vmatpush3.bf16.msra.mxu0 %v2294_v28  ;;  %v3744_v28 = vld [vmem:[#allocation12 + $0xac] sm:$0xf] }
 0x196   :  { %2724 = vmatprep.subr.bf16.mxu0 %v3258_v0  ;;  %v2327_v29 = vcombine.low %v3742_v27, %v3744_v28 }
 0x197   :  { %2719 = vmatpush3.bf16.msra.mxu1 %v2302_v37  ;;  %v1190_v37 = vld [vmem:[#allocation12 + $0x90] sm:$0xf] }
 0x198   :  { %2744 = vmatprep.subr.bf16.mxu1 %v3258_v0  ;;  %v2324_v39 = vcombine.low %v1190_v37, %v1191_v38 }
 0x217   :  { %v617_v59 = vpop.f32.mrf.mxu1 }
 0x219   :  { %v2642_v60 = vpop.f32.mrf.mxu1 }
 0x21b   :  { %v620_v61 = vpop.f32.mrf.mxu1 }
 0x21d   :  { %v2643_v62 = vpop.f32.mrf.mxu1 }
 0x238   :  { %v705_v1 = vpop.f32.mrf.mxu0 }
 0x239   :  { %v816_v2 = vsub.f32 %v617_v59, %v705_v1 }
 0x23a   :  { %v2662_v3 = vpop.f32.mrf.mxu0  ;;  %v810_v4 = vpop.f32.mrf.mxu1 }
 0x23b   :  { %v823_v5 = vadd.f32 %v2290_v63, %v816_v2  ;;  %v824_v6 = vsub.f32 %v810_v4, %v617_v59  ;;  %v1214_v59 = vld [vmem:[#allocation13 + $0xac] sm:$0xf]  ;;  %v1212_v2 = vld [vmem:[#allocation13 + $0xa4] sm:$0xf] }
 0x23c   :  { %v708_v8 = vpop.f32.mrf.mxu0  ;;  %v2682_v9 = vpop.f32.mrf.mxu1  ;;  %v1411_v62 = vadd.bf16 %v1214_v59, %v3744_v28 }
 0x23d   :  { %v833_v10 = vmax.f32 %v823_v5, 0.0  ;;  %v825_v11 = vsub.f32 %v824_v6, %v705_v1  ;;  %v1211_v1 = vld [vmem:[#allocation13 + $0xa0] sm:$0xf]  ;;  %v1409_v5 = vadd.bf16 %v1212_v2, %v1195_v32  ;;  %v1210_v8 = vld [vmem:[#allocation13 + $0x9c] sm:$0xf] }
 0x23e   :  { %v2663_v12 = vpop.f32.mrf.mxu0  ;;  %v813_v13 = vpop.f32.mrf.mxu1  ;;  %v2334_v3 = vcombine.low %v1211_v1, %v1212_v2  ;;  %v1408_v4 = vadd.bf16 %v1211_v1, %v1194_v31  ;;  %v3838_v2 = vld [vmem:[#allocation13 + $0xf0] sm:$0xf] }
 0x23f   :  { %v834_v14 = vpack.c.bf16 %v833_v10, %v833_v10  ;;  %v832_v15 = vadd.f32 %v2291_v7, %v825_v11  ;;  %v1209_v7 = vld [vmem:[#allocation13 + $0x98] sm:$0xf]  ;;  %v1407_v11 = vadd.bf16 %v1210_v8, %v1193_v35  ;;  %v1207_v13 = vld [vmem:[#allocation13 + $0x90] sm:$0xf] }
 0x240   :  { %v2683_v16 = vpop.f32.mrf.mxu1  ;;  %v2342_v6 = vcombine.low %v1408_v4, %v1409_v5  ;;  %v2333_v9 = vcombine.low %v1209_v7, %v1210_v8  ;;  %v3842_v4 = vld [vmem:[#allocation13 + $0xf4] sm:$0xf]  ;;  %v3845_v5 = vld [vmem:[#allocation12 + $0xe8] sm:$0xf] }
 0x241   :  { %835 = vst [vmem:[#allocation2] sm:$0xf] %v834_v14  ;;  %v836_v17 = vmax.f32 %v832_v15, 0.0  ;;  %v1208_v14 = vld [vmem:[#allocation13 + $0x94] sm:$0xf]  ;;  %v1404_v16 = vadd.bf16 %v1207_v13, %v1190_v37 }
 0x242   :  { %v2332_v15 = vcombine.low %v1207_v13, %v1208_v14  ;;  %v3852_v8 = vld [vmem:[#allocation13 + $0xe8] sm:$0xf] }
 0x243   :  { %v837_v18 = vpack.c.bf16 %v836_v17, %v836_v17  ;;  %v1405_v17 = vadd.bf16 %v1208_v14, %v1191_v38 }
 0x245   :  { %838 = vst [vmem:[#allocation3] sm:$0xf] %v837_v18  ;;  %v2340_v18 = vcombine.low %v1404_v16, %v1405_v17  ;;  %v1537_v16 = vld [vmem:[#allocation12 + $0xdc] sm:$0xf] }
 0x248   :  { %v839_v21 = vld [vmem:[#allocation2] sm:$0xf] }
 0x249   :  { %2701 = vmatmul.mubr.bf16.vlgmr.msra.gmra.mxu0 %v839_v21 }
 0x24a   :  { %2725 = vmatpush3.bf16.msra.mxu0 %v2317_v34  ;;  %2740 = vmatprep.mubr.msk.bf16.mxu0 %vm3259_vm0, %v3258_v0  ;;  %v1192_v34 = vld [vmem:[#allocation12 + $0x98] sm:$0xf] }
 0x24b   :  { %2726 = vmatprep.subr.bf16.mxu0 %v3258_v0  ;;  %v2325_v36 = vcombine.low %v1192_v34, %v1193_v35  ;;  %v1406_v10 = vadd.bf16 %v1209_v7, %v1192_v34  ;;  %v2318_v34 = vld [vmem:[%s4015_s10 + $0x1] ss:$0 sm:$0xff]  ;;  %v2364_v7 = vcombine.low %v3838_v2, %v3842_v4 }
 0x24c   :  { %v840_v25 = vld [vmem:[#allocation3] sm:$0xf] }
 0x24d   :  { %2721 = vmatmul.mubr.bf16.vlgmr.msra.gmra.mxu1 %v840_v25  ;;  %v1055_v30 = vadd.bf16 %v840_v25, %v839_v21  ;;  %v2341_v12 = vcombine.low %v1406_v10, %v1407_v11  ;;  %v1203_v25 = vld [vmem:[#allocation13 + $0x80] sm:$0xf] }
 0x24e   :  { %2727 = vmatpush3.bf16.msra.mxu0 %v2316_v40  ;;  %2745 = vmatpush3.bf16.msra.mxu1 %v2329_v22  ;;  %v3764_v40 = vld [vmem:[#allocation12 + $0x88] sm:$0xf]  ;;  %v3859_v11 = vld [vmem:[#allocation12 + $0xe0] sm:$0xf] }
 0x24f   :  { %2728 = vmatprep.subr.bf16.mxu0 %v3258_v0  ;;  %2746 = vmatprep.subr.bf16.mxu1 %v3258_v0  ;;  %v2323_v42 = vcombine.low %v3764_v40, %v3766_v41 }
 0x250   :  { %2760 = vmatprep.mubr.msk.bf16.mxu1 %vm3259_vm0, %v3258_v0 }
 0x252   :  { %2729 = vmatpush3.bf16.msra.mxu0 %v2315_v43  ;;  %2747 = vmatpush3.bf16.msra.mxu1 %v2328_v26  ;;  %v3770_v43 = vld [vmem:[#allocation12 + $0x80] sm:$0xf]  ;;  %v1204_v26 = vld [vmem:[#allocation13 + $0x84] sm:$0xf] }
 0x253   :  { %2730 = vmatprep.subr.bf16.mxu0 %v3258_v0  ;;  %2748 = vmatprep.subr.bf16.mxu1 %v3258_v0  ;;  %v1400_v28 = vadd.bf16 %v1203_v25, %v3770_v43 }
 0x256   :  { %2731 = vmatpush3.bf16.msra.mxu0 %v2314_v46  ;;  %2749 = vmatpush3.bf16.msra.mxu1 %v2327_v29  ;;  %v2322_v46 = vcombine.low %v3770_v43, %v3772_v44  ;;  %v1401_v29 = vadd.bf16 %v1204_v26, %v3772_v44 }
 0x257   :  { %2732 = vmatprep.subr.bf16.mxu0 %v3258_v0  ;;  %2750 = vmatprep.subr.bf16.mxu1 %v3258_v0 }
 0x25a   :  { %2733 = vmatpush3.bf16.msra.mxu0 %v3717_v49  ;;  %2751 = vmatpush3.bf16.msra.mxu1 %v2326_v33  ;;  %v1414_v49 = vadd.bf16 %v1217_v45, %v3725_v19  ;;  %v1205_v19 = vld [vmem:[#allocation13 + $0x88] sm:$0xf] }
 0x25b   :  { %2734 = vmatprep.subr.bf16.mxu0 %v3258_v0  ;;  %2752 = vmatprep.subr.bf16.mxu1 %v3258_v0  ;;  %v2331_v21 = vcombine.low %v1205_v19, %v1206_v20  ;;  %v1402_v22 = vadd.bf16 %v1205_v19, %v3764_v40  ;;  %v1556_v19 = vld [vmem:[#allocation13 + $0xe4] sm:$0xf] }
 0x25c   :  { %v3781_v51 = vcombine.low %v1414_v49, %v1415_v50 }
 0x25e   :  { %2735 = vmatpush3.bf16.msra.mxu0 %v2312_v52  ;;  %2753 = vmatpush3.bf16.msra.mxu1 %v2325_v36  ;;  %v1215_v52 = vld [vmem:[#allocation13 + $0xb0] sm:$0xf] }
 0x25f   :  { %2736 = vmatprep.subr.bf16.mxu0 %v3258_v0  ;;  %2754 = vmatprep.subr.bf16.mxu1 %v3258_v0  ;;  %v2336_v54 = vcombine.low %v1215_v52, %v1216_v53 }
 0x262   :  { %2737 = vmatpush3.bf16.msra.mxu0 %v2311_v55  ;;  %2755 = vmatpush3.bf16.msra.mxu1 %v2324_v39  ;;  %v1412_v55 = vadd.bf16 %v1215_v52, %v3734_v23  ;;  %v1403_v23 = vadd.bf16 %v1206_v20, %v3766_v41 }
 0x263   :  { %2738 = vmatprep.subr.bf16.mxu0 %v3258_v0  ;;  %2756 = vmatprep.subr.bf16.mxu1 %v3258_v0 }
 0x264   :  { %v3785_v57 = vcombine.low %v1412_v55, %v1413_v56  ;;  %v2339_v24 = vcombine.low %v1402_v22, %v1403_v23  ;;  %v1535_v22 = vld [vmem:[#allocation12 + $0xd4] sm:$0xf] }
 0x266   :  { %2739 = vmatpush3.bf16.msra.mxu0 %v2310_v58  ;;  %2757 = vmatpush3.bf16.msra.mxu1 %v2323_v42  ;;  %v1213_v58 = vld [vmem:[#allocation13 + $0xa8] sm:$0xf] }
 0x267   :  { %2764 = vmatprep.subr.bf16.mxu0 %v3258_v0  ;;  %2758 = vmatprep.subr.bf16.mxu1 %v3258_v0  ;;  %v2335_v60 = vcombine.low %v1213_v58, %v1214_v59  ;;  %v1410_v61 = vadd.bf16 %v1213_v58, %v3742_v27  ;;  %v2330_v27 = vcombine.low %v1203_v25, %v1204_v26  ;;  %v3824_v58 = vld [vmem:[#allocation12 + $0xfc] sm:$0xf]  ;;  %v3826_v59 = vld [vmem:[#allocation12 + $0xf0] sm:$0xf] }
 0x268   :  { %v1554_v25 = vld [vmem:[#allocation13 + $0xdc] sm:$0xf] }
 0x269   :  { %2741 = vmatmul.mubr.bf16.vlgmr.msra.gmra.mxu0 %v1055_v30  ;;  %v2343_v63 = vcombine.low %v1410_v61, %v1411_v62  ;;  %v2338_v30 = vcombine.low %v1400_v28, %v1401_v29  ;;  %v3830_v61 = vld [vmem:[#allocation12 + $0xf4] sm:$0xf]  ;;  %v3832_v62 = vld [vmem:[#allocation13 + $0xf8] sm:$0xf]  ;;  %v1533_v28 = vld [vmem:[#allocation12 + $0xcc] sm:$0xf] }
 0x26a   :  { %2780 = vmatprep.mubr.msk.bf16.mxu0 %vm3259_vm0, %v3258_v0  ;;  %2765 = vmatpush3.bf16.msra.mxu0 %v2337_v48 }
 0x26b   :  { %2759 = vmatpush3.bf16.msra.mxu1 %v2322_v46  ;;  %2766 = vmatprep.subr.bf16.mxu0 %v3258_v0 }
 0x26c   :  { %2784 = vmatprep.subr.bf16.mxu1 %v3258_v0 }
 0x26e   :  { %2767 = vmatpush3.bf16.msra.mxu0 %v2336_v54 }
 0x26f   :  { %2768 = vmatprep.subr.bf16.mxu0 %v3258_v0 }
 0x272   :  { %2769 = vmatpush3.bf16.msra.mxu0 %v2335_v60 }
 0x273   :  { %2770 = vmatprep.subr.bf16.mxu0 %v3258_v0 }
 0x276   :  { %2771 = vmatpush3.bf16.msra.mxu0 %v2334_v3  ;;  %v2356_v3 = vcombine.low %v3826_v59, %v3830_v61 }
 0x277   :  { %2772 = vmatprep.subr.bf16.mxu0 %v3258_v0 }
 0x27a   :  { %2773 = vmatpush3.bf16.msra.mxu0 %v2333_v9  ;;  %v3854_v9 = vld [vmem:[#allocation13 + $0xec] sm:$0xf] }
 0x27b   :  { %2774 = vmatprep.subr.bf16.mxu0 %v3258_v0  ;;  %v2363_v13 = vcombine.low %v3852_v8, %v3854_v9 }
 0x27e   :  { %2775 = vmatpush3.bf16.msra.mxu0 %v2332_v15  ;;  %v1536_v15 = vld [vmem:[#allocation12 + $0xd8] sm:$0xf] }
 0x27f   :  { %2776 = vmatprep.subr.bf16.mxu0 %v3258_v0  ;;  %v2353_v17 = vcombine.low %v1536_v15, %v1537_v16 }
 0x282   :  { %2777 = vmatpush3.bf16.msra.mxu0 %v2331_v21  ;;  %v1534_v21 = vld [vmem:[#allocation12 + $0xd0] sm:$0xf] }
 0x283   :  { %2778 = vmatprep.subr.bf16.mxu0 %v3258_v0  ;;  %v2352_v23 = vcombine.low %v1534_v21, %v1535_v22 }
 0x286   :  { %2779 = vmatpush3.bf16.msra.mxu0 %v2330_v27  ;;  %v1532_v27 = vld [vmem:[#allocation12 + $0xc8] sm:$0xf] }
 0x287   :  { %2804 = vmatprep.subr.bf16.mxu0 %v3258_v0  ;;  %v2351_v29 = vcombine.low %v1532_v27, %v1533_v28 }
 0x309   :  { %v961_v31 = vpop.f32.mrf.mxu0 }
 0x30b   :  { %v2702_v32 = vpop.f32.mrf.mxu0 }
 0x30d   :  { %v964_v33 = vpop.f32.mrf.mxu0  ;;  %v1049_v35 = vpop.f32.mrf.mxu1 }
 0x30e   :  { %v1160_v36 = vsub.f32 %v961_v31, %v1049_v35  ;;  %v1530_v33 = vld [vmem:[#allocation12 + $0xc0] sm:$0xf] }
 0x30f   :  { %v2703_v37 = vpop.f32.mrf.mxu0  ;;  %v2722_v38 = vpop.f32.mrf.mxu1 }
 0x310   :  { %v1167_v39 = vadd.f32 %v2318_v34, %v1160_v36  ;;  %v1531_v34 = vld [vmem:[#allocation12 + $0xc4] sm:$0xf]  ;;  %v1549_v36 = vld [vmem:[#allocation13 + $0xc8] sm:$0xf]  ;;  %v1550_v37 = vld [vmem:[#allocation13 + $0xcc] sm:$0xf] }
 0x311   :  { %v1052_v40 = vpop.f32.mrf.mxu1  ;;  %v2359_v38 = vcombine.low %v1549_v36, %v1550_v37 }
 0x312   :  { %v1177_v41 = vmax.f32 %v1167_v39, 0.0 }
 0x313   :  { %v2723_v42 = vpop.f32.mrf.mxu1 }
 0x314   :  { %v1178_v43 = vpack.c.bf16 %v1177_v41, %v1177_v41  ;;  %v1547_v42 = vld [vmem:[#allocation13 + $0xc0] sm:$0xf] }
 0x316   :  { %1179 = vst [vmem:[#allocation2] sm:$0xf] %v1178_v43  ;;  %v1548_v43 = vld [vmem:[#allocation13 + $0xc4] sm:$0xf] }
 0x31d   :  { %v1183_v44 = vld [vmem:[#allocation2] sm:$0xf] }
 0x31e   :  { %2761 = vmatmul.mubr.bf16.vlgmr.msra.gmra.mxu1 %v1183_v44 }
 0x31f   :  { %2785 = vmatpush3.bf16.msra.mxu1 %v3781_v51  ;;  %2800 = vmatprep.mubr.msk.bf16.mxu1 %vm3259_vm0, %v3258_v0 }
 0x320   :  { %2786 = vmatprep.subr.bf16.mxu1 %v3258_v0 }
 0x323   :  { %2787 = vmatpush3.bf16.msra.mxu1 %v3785_v57  ;;  %v3822_v57 = vld [vmem:[#allocation12 + $0xf8] sm:$0xf] }
 0x324   :  { %2788 = vmatprep.subr.bf16.mxu1 %v3258_v0  ;;  %v2357_v60 = vcombine.low %v3822_v57, %v3824_v58  ;;  %v1758_v39 = vadd.bf16 %v3832_v62, %v3822_v57 }
 0x327   :  { %2789 = vmatpush3.bf16.msra.mxu1 %v2343_v63  ;;  %v3834_v63 = vld [vmem:[#allocation13 + $0xfc] sm:$0xf] }
 0x328   :  { %2790 = vmatprep.subr.bf16.mxu1 %v3258_v0  ;;  %v2365_v1 = vcombine.low %v3832_v62, %v3834_v63  ;;  %v1759_v40 = vadd.bf16 %v3834_v63, %v3824_v58  ;;  %v1744_v63 = vadd.bf16 %v1547_v42, %v1530_v33 }
 0x329   :  { %v1154_v45 = vpop.f32.mrf.mxu0 }
 0x32a   :  { %v1168_v46 = vsub.f32 %v1154_v45, %v961_v31  ;;  %v1552_v31 = vld [vmem:[#allocation13 + $0xd4] sm:$0xf]  ;;  %v2373_v41 = vcombine.low %v1758_v39, %v1759_v40  ;;  %v1756_v45 = vadd.bf16 %v3838_v2, %v3826_v59  ;;  %v1882_v39 = vld [vmem:[#allocation15 + $0x24] sm:$0xf] }
 0x32b   :  { %v2742_v48 = vpop.f32.mrf.mxu0  ;;  %2791 = vmatpush3.bf16.msra.mxu1 %v2342_v6  ;;  %v3847_v6 = vld [vmem:[#allocation12 + $0xec] sm:$0xf]  ;;  %v1749_v58 = vadd.bf16 %v1552_v31, %v1535_v22 }
 0x32c   :  { %v1169_v49 = vsub.f32 %v1168_v46, %v1049_v35  ;;  %2792 = vmatprep.subr.bf16.mxu1 %v3258_v0  ;;  %v2355_v10 = vcombine.low %v3845_v5, %v3847_v6  ;;  %v2350_v35 = vcombine.low %v1530_v33, %v1531_v34  ;;  %v1757_v46 = vadd.bf16 %v3842_v4, %v3830_v61 }
 0x32d   :  { %v1157_v50 = vpop.f32.mrf.mxu0  ;;  %v1754_v48 = vadd.bf16 %v3852_v8, %v3845_v5  ;;  %v1747_v61 = vadd.bf16 %v1550_v37, %v1533_v28 }
 0x32e   :  { %v1176_v51 = vadd.f32 %v2319_v47, %v1169_v49  ;;  %v2372_v47 = vcombine.low %v1756_v45, %v1757_v46  ;;  %v1755_v49 = vadd.bf16 %v3854_v9, %v3847_v6  ;;  %v1878_v45 = vld [vmem:[#allocation15 + $0x14] sm:$0xf] }
 0x32f   :  { %v2743_v52 = vpop.f32.mrf.mxu0  ;;  %2793 = vmatpush3.bf16.msra.mxu1 %v2341_v12  ;;  %v3861_v12 = vld [vmem:[#allocation12 + $0xe4] sm:$0xf] }
 0x330   :  { %v1180_v53 = vmax.f32 %v1176_v51, 0.0  ;;  %2794 = vmatprep.subr.bf16.mxu1 %v3258_v0  ;;  %v2354_v14 = vcombine.low %v3859_v11, %v3861_v12  ;;  %v2371_v50 = vcombine.low %v1754_v48, %v1755_v49  ;;  %v1753_v52 = vadd.bf16 %v1556_v19, %v3861_v12  ;;  %v3943_v48 = vld [vmem:[#allocation15 + $0xc] sm:$0xf] }
 0x332   :  { %v1181_v54 = vpack.c.bf16 %v1180_v53, %v1180_v53 }
 0x333   :  { %2795 = vmatpush3.bf16.msra.mxu1 %v2340_v18  ;;  %v1555_v18 = vld [vmem:[#allocation13 + $0xe0] sm:$0xf] }
 0x334   :  { %1182 = vst [vmem:[#allocation3] sm:$0xf] %v1181_v54  ;;  %2796 = vmatprep.subr.bf16.mxu1 %v3258_v0  ;;  %v2362_v20 = vcombine.low %v1555_v18, %v1556_v19  ;;  %v1752_v51 = vadd.bf16 %v1555_v18, %v3859_v11 }
 0x336   :  { %v2370_v53 = vcombine.low %v1752_v51, %v1753_v52  ;;  %v3949_v51 = vld [vmem:[#allocation15 + $0x4] sm:$0xf]  ;;  %v1903_v52 = vld [vmem:[#allocation16 + $0x38] sm:$0xf] }
 0x337   :  { %2797 = vmatpush3.bf16.msra.mxu1 %v2339_v24  ;;  %v1553_v24 = vld [vmem:[#allocation13 + $0xd8] sm:$0xf] }
 0x338   :  { %2798 = vmatprep.subr.bf16.mxu1 %v3258_v0  ;;  %v2361_v26 = vcombine.low %v1553_v24, %v1554_v25  ;;  %v1750_v54 = vadd.bf16 %v1553_v24, %v1536_v15 }
 0x33b   :  { %2799 = vmatpush3.bf16.msra.mxu1 %v2338_v30  ;;  %v1184_v55 = vld [vmem:[#allocation3] sm:$0xf]  ;;  %v1551_v30 = vld [vmem:[#allocation13 + $0xd0] sm:$0xf] }
 0x33c   :  { %2781 = vmatmul.mubr.bf16.vlgmr.msra.gmra.mxu0 %v1184_v55  ;;  %v1399_v56 = vadd.bf16 %v1184_v55, %v1183_v44  ;;  %2824 = vmatprep.subr.bf16.mxu1 %v3258_v0  ;;  %v2360_v32 = vcombine.low %v1551_v30, %v1552_v31  ;;  %v2358_v44 = vcombine.low %v1547_v42, %v1548_v43  ;;  %v3913_v31 = vld [vmem:[#allocation15 + $0x34] sm:$0xf]  ;;  %v1880_v42 = vld [vmem:[#allocation15 + $0x1c] sm:$0xf] }
 0x33d   :  { %2820 = vmatprep.mubr.msk.bf16.mxu0 %vm3259_vm0, %v3258_v0  ;;  %2805 = vmatpush3.bf16.msra.mxu0 %v2357_v60  ;;  %v1751_v55 = vadd.bf16 %v1554_v25, %v1537_v16  ;;  %v1748_v57 = vadd.bf16 %v1551_v30, %v1534_v21  ;;  %v1746_v60 = vadd.bf16 %v1549_v36, %v1532_v27  ;;  %v3904_v27 = vld [vmem:[#allocation15 + $0x3c] sm:$0xf]  ;;  %v3911_v30 = vld [vmem:[#allocation15 + $0x30] sm:$0xf] }
 0x33e   :  { %2801 = vmatmul.mubr.bf16.vlgmr.msra.gmra.mxu1 %v1399_v56  ;;  %2806 = vmatprep.subr.bf16.mxu0 %v3258_v0  ;;  %v2382_v33 = vcombine.low %v3911_v30, %v3913_v31 }
 0x33f   :  { %2840 = vmatprep.mubr.msk.bf16.mxu1 %vm3259_vm0, %v3258_v0  ;;  %2825 = vmatpush3.bf16.msra.mxu1 %v2365_v1  ;;  %v3894_v56 = vcombine.low %v1750_v54, %v1751_v55  ;;  %v2368_v59 = vcombine.low %v1748_v57, %v1749_v58  ;;  %v2367_v62 = vcombine.low %v1746_v60, %v1747_v61  ;;  %v1904_v54 = vld [vmem:[#allocation16 + $0x3c] sm:$0xf]  ;;  %v1902_v60 = vld [vmem:[#allocation16 + $0x34] sm:$0xf] }
 0x340   :  { %2826 = vmatprep.subr.bf16.mxu1 %v3258_v0  ;;  %v1745_v1 = vadd.bf16 %v1548_v43, %v1531_v34  ;;  %v3919_v34 = vld [vmem:[#allocation15 + $0x28] sm:$0xf]  ;;  %v2391_v55 = vcombine.low %v1903_v52, %v1904_v54  ;;  %v2099_v57 = vadd.bf16 %v1904_v54, %v3904_v27 }
 0x341   :  { %2807 = vmatpush3.bf16.msra.mxu0 %v2356_v3  ;;  %v2375_v54 = vld [vmem:[%s4016_s11 + $0x3] ss:$0 sm:$0xff] }
 0x342   :  { %2808 = vmatprep.subr.bf16.mxu0 %v3258_v0  ;;  %v2366_v2 = vcombine.low %v1744_v63, %v1745_v1  ;;  %v2097_v63 = vadd.bf16 %v1902_v60, %v3913_v31 }
 0x343   :  { %2827 = vmatpush3.bf16.msra.mxu1 %v2364_v7  ;;  %v2346_v7 = vld [vmem:[%s4015_s10 + $0x2] ss:$0 sm:$0xff] }
 0x344   :  { %2828 = vmatprep.subr.bf16.mxu1 %v3258_v0 }
 0x345   :  { %2809 = vmatpush3.bf16.msra.mxu0 %v2355_v10 }
 0x346   :  { %2810 = vmatprep.subr.bf16.mxu0 %v3258_v0 }
 0x347   :  { %2829 = vmatpush3.bf16.msra.mxu1 %v2363_v13 }
 0x348   :  { %2830 = vmatprep.subr.bf16.mxu1 %v3258_v0 }
 0x349   :  { %2811 = vmatpush3.bf16.msra.mxu0 %v2354_v14  ;;  %v2347_v14 = vld [vmem:[%s4016_s11 + $0x2] ss:$0 sm:$0xff] }
 0x34a   :  { %2812 = vmatprep.subr.bf16.mxu0 %v3258_v0 }
 0x34b   :  { %2831 = vmatpush3.bf16.msra.mxu1 %v2362_v20 }
 0x34c   :  { %2832 = vmatprep.subr.bf16.mxu1 %v3258_v0 }
 0x34d   :  { %2813 = vmatpush3.bf16.msra.mxu0 %v2353_v17 }
 0x34e   :  { %2814 = vmatprep.subr.bf16.mxu0 %v3258_v0 }
 0x34f   :  { %2833 = vmatpush3.bf16.msra.mxu1 %v2361_v26  ;;  %v3902_v26 = vld [vmem:[#allocation15 + $0x38] sm:$0xf] }
 0x350   :  { %2834 = vmatprep.subr.bf16.mxu1 %v3258_v0 }
 0x351   :  { %2815 = vmatpush3.bf16.msra.mxu0 %v2352_v23 }
 0x352   :  { %2816 = vmatprep.subr.bf16.mxu0 %v3258_v0 }
 0x353   :  { %2835 = vmatpush3.bf16.msra.mxu1 %v2360_v32 }
 0x354   :  { %2836 = vmatprep.subr.bf16.mxu1 %v3258_v0 }
 0x355   :  { %2817 = vmatpush3.bf16.msra.mxu0 %v2351_v29  ;;  %v2383_v29 = vcombine.low %v3902_v26, %v3904_v27  ;;  %v1892_v27 = vld [vmem:[#allocation16 + $0xc] sm:$0xf] }
 0x356   :  { %2818 = vmatprep.subr.bf16.mxu0 %v3258_v0 }
 0x357   :  { %2837 = vmatpush3.bf16.msra.mxu1 %v2359_v38  ;;  %v1881_v38 = vld [vmem:[#allocation15 + $0x20] sm:$0xf] }
 0x358   :  { %2838 = vmatprep.subr.bf16.mxu1 %v3258_v0  ;;  %v2380_v40 = vcombine.low %v1881_v38, %v1882_v39 }
 0x359   :  { %2819 = vmatpush3.bf16.msra.mxu0 %v2350_v35  ;;  %v3921_v35 = vld [vmem:[#allocation15 + $0x2c] sm:$0xf] }
 0x35a   :  { %2844 = vmatprep.subr.bf16.mxu0 %v3258_v0  ;;  %v2381_v36 = vcombine.low %v3919_v34, %v3921_v35 }
 0x35b   :  { %2839 = vmatpush3.bf16.msra.mxu1 %v2358_v44  ;;  %v1877_v44 = vld [vmem:[#allocation15 + $0x10] sm:$0xf] }
 0x35c   :  { %2864 = vmatprep.subr.bf16.mxu1 %v3258_v0  ;;  %v2378_v46 = vcombine.low %v1877_v44, %v1878_v45 }
 0x3de   :  { %v1305_v3 = vpop.f32.mrf.mxu1 }
 0x3e0   :  { %v2762_v4 = vpop.f32.mrf.mxu1 }
 0x3e2   :  { %v1308_v5 = vpop.f32.mrf.mxu1 }
 0x3e4   :  { %v2763_v6 = vpop.f32.mrf.mxu1 }
 0x3fc   :  { %v1393_v8 = vpop.f32.mrf.mxu0 }
 0x3fd   :  { %v1504_v9 = vsub.f32 %v1305_v3, %v1393_v8 }
 0x3fe   :  { %v2782_v10 = vpop.f32.mrf.mxu0  ;;  %v1498_v11 = vpop.f32.mrf.mxu1 }
 0x3ff   :  { %v1511_v12 = vadd.f32 %v2346_v7, %v1504_v9  ;;  %v1512_v13 = vsub.f32 %v1498_v11, %v1305_v3  ;;  %v1900_v3 = vld [vmem:[#allocation16 + $0x2c] sm:$0xf]  ;;  %v1898_v9 = vld [vmem:[#allocation16 + $0x24] sm:$0xf] }
 0x400   :  { %v1396_v15 = vpop.f32.mrf.mxu0  ;;  %v2802_v16 = vpop.f32.mrf.mxu1  ;;  %v2095_v6 = vadd.bf16 %v1900_v3, %v3921_v35 }
 0x401   :  { %v1521_v17 = vmax.f32 %v1511_v12, 0.0  ;;  %v1513_v18 = vsub.f32 %v1512_v13, %v1393_v8  ;;  %v1897_v8 = vld [vmem:[#allocation16 + $0x20] sm:$0xf]  ;;  %v2093_v12 = vadd.bf16 %v1898_v9, %v1882_v39  ;;  %v1896_v15 = vld [vmem:[#allocation16 + $0x1c] sm:$0xf] }
 0x402   :  { %v2783_v19 = vpop.f32.mrf.mxu0  ;;  %v1501_v20 = vpop.f32.mrf.mxu1  ;;  %v2388_v10 = vcombine.low %v1897_v8, %v1898_v9  ;;  %v2092_v11 = vadd.bf16 %v1897_v8, %v1881_v38 }
 0x403   :  { %v1522_v21 = vpack.c.bf16 %v1521_v17, %v1521_v17  ;;  %v1520_v22 = vadd.f32 %v2347_v14, %v1513_v18  ;;  %v1895_v14 = vld [vmem:[#allocation16 + $0x18] sm:$0xf]  ;;  %v2091_v18 = vadd.bf16 %v1896_v15, %v1880_v42  ;;  %v1893_v20 = vld [vmem:[#allocation16 + $0x10] sm:$0xf] }
 0x404   :  { %v2803_v23 = vpop.f32.mrf.mxu1  ;;  %v2396_v13 = vcombine.low %v2092_v11, %v2093_v12  ;;  %v2387_v16 = vcombine.low %v1895_v14, %v1896_v15 }
 0x405   :  { %1523 = vst [vmem:[#allocation2] sm:$0xf] %v1522_v21  ;;  %v1524_v24 = vmax.f32 %v1520_v22, 0.0  ;;  %v1894_v21 = vld [vmem:[#allocation16 + $0x14] sm:$0xf]  ;;  %v2088_v23 = vadd.bf16 %v1893_v20, %v1877_v44 }
 0x406   :  { %v2386_v22 = vcombine.low %v1893_v20, %v1894_v21 }
 0x407   :  { %v1525_v25 = vpack.c.bf16 %v1524_v24, %v1524_v24  ;;  %v2089_v24 = vadd.bf16 %v1894_v21, %v1878_v45 }
 0x409   :  { %1526 = vst [vmem:[#allocation3] sm:$0xf] %v1525_v25  ;;  %v2394_v25 = vcombine.low %v2088_v23, %v2089_v24 }
 0x40c   :  { %v1527_v28 = vld [vmem:[#allocation2] sm:$0xf] }
 0x40d   :  { %2821 = vmatmul.mubr.bf16.vlgmr.msra.gmra.mxu0 %v1527_v28 }
 0x40e   :  { %2845 = vmatpush3.bf16.msra.mxu0 %v2373_v41  ;;  %2860 = vmatprep.mubr.msk.bf16.mxu0 %vm3259_vm0, %v3258_v0  ;;  %v1879_v41 = vld [vmem:[#allocation15 + $0x18] sm:$0xf] }
 0x40f   :  { %2846 = vmatprep.subr.bf16.mxu0 %v3258_v0  ;;  %v2379_v43 = vcombine.low %v1879_v41, %v1880_v42  ;;  %v2090_v17 = vadd.bf16 %v1895_v14, %v1879_v41  ;;  %v2374_v41 = vld [vmem:[%s4015_s10 + $0x3] ss:$0 sm:$0xff] }
 0x410   :  { %v1528_v32 = vld [vmem:[#allocation3] sm:$0xf] }
 0x411   :  { %2841 = vmatmul.mubr.bf16.vlgmr.msra.gmra.mxu1 %v1528_v32  ;;  %v1743_v37 = vadd.bf16 %v1528_v32, %v1527_v28  ;;  %v2395_v19 = vcombine.low %v2090_v17, %v2091_v18  ;;  %v1889_v32 = vld [vmem:[#allocation16] sm:$0xf] }
 0x412   :  { %2847 = vmatpush3.bf16.msra.mxu0 %v2372_v47  ;;  %2865 = vmatpush3.bf16.msra.mxu1 %v2383_v29  ;;  %v3941_v47 = vld [vmem:[#allocation15 + $0x8] sm:$0xf] }
 0x413   :  { %2848 = vmatprep.subr.bf16.mxu0 %v3258_v0  ;;  %2866 = vmatprep.subr.bf16.mxu1 %v3258_v0  ;;  %v2377_v49 = vcombine.low %v3941_v47, %v3943_v48 }
 0x414   :  { %2880 = vmatprep.mubr.msk.bf16.mxu1 %vm3259_vm0, %v3258_v0 }
 0x416   :  { %2849 = vmatpush3.bf16.msra.mxu0 %v2371_v50  ;;  %2867 = vmatpush3.bf16.msra.mxu1 %v2382_v33  ;;  %v3947_v50 = vld [vmem:[#allocation15] sm:$0xf]  ;;  %v1890_v33 = vld [vmem:[#allocation16 + $0x4] sm:$0xf] }
 0x417   :  { %2850 = vmatprep.subr.bf16.mxu0 %v3258_v0  ;;  %2868 = vmatprep.subr.bf16.mxu1 %v3258_v0  ;;  %v2084_v35 = vadd.bf16 %v1889_v32, %v3947_v50 }
 0x41a   :  { %2851 = vmatpush3.bf16.msra.mxu0 %v2370_v53  ;;  %2869 = vmatpush3.bf16.msra.mxu1 %v2381_v36  ;;  %v2376_v53 = vcombine.low %v3947_v50, %v3949_v51  ;;  %v2085_v36 = vadd.bf16 %v1890_v33, %v3949_v51 }
 0x41b   :  { %2852 = vmatprep.subr.bf16.mxu0 %v3258_v0  ;;  %2870 = vmatprep.subr.bf16.mxu1 %v3258_v0 }
 0x41e   :  { %2853 = vmatpush3.bf16.msra.mxu0 %v3894_v56  ;;  %2871 = vmatpush3.bf16.msra.mxu1 %v2380_v40  ;;  %v2098_v56 = vadd.bf16 %v1903_v52, %v3902_v26  ;;  %v1891_v26 = vld [vmem:[#allocation16 + $0x8] sm:$0xf] }
 0x41f   :  { %2854 = vmatprep.subr.bf16.mxu0 %v3258_v0  ;;  %2872 = vmatprep.subr.bf16.mxu1 %v3258_v0  ;;  %v2385_v28 = vcombine.low %v1891_v26, %v1892_v27  ;;  %v2086_v29 = vadd.bf16 %v1891_v26, %v3941_v47 }
 0x420   :  { %v3958_v58 = vcombine.low %v2098_v56, %v2099_v57 }
 0x422   :  { %2855 = vmatpush3.bf16.msra.mxu0 %v2368_v59  ;;  %2873 = vmatpush3.bf16.msra.mxu1 %v2379_v43  ;;  %v1901_v59 = vld [vmem:[#allocation16 + $0x30] sm:$0xf] }
 0x423   :  { %2856 = vmatprep.subr.bf16.mxu0 %v3258_v0  ;;  %2874 = vmatprep.subr.bf16.mxu1 %v3258_v0  ;;  %v2390_v61 = vcombine.low %v1901_v59, %v1902_v60 }
 0x426   :  { %2857 = vmatpush3.bf16.msra.mxu0 %v2367_v62  ;;  %2875 = vmatpush3.bf16.msra.mxu1 %v2378_v46  ;;  %v2096_v62 = vadd.bf16 %v1901_v59, %v3911_v30  ;;  %v2087_v30 = vadd.bf16 %v1892_v27, %v3943_v48 }
 0x427   :  { %2858 = vmatprep.subr.bf16.mxu0 %v3258_v0  ;;  %2876 = vmatprep.subr.bf16.mxu1 %v3258_v0 }
 0x428   :  { %v3962_v1 = vcombine.low %v2096_v62, %v2097_v63  ;;  %v2393_v31 = vcombine.low %v2086_v29, %v2087_v30 }
 0x42a   :  { %2859 = vmatpush3.bf16.msra.mxu0 %v2366_v2  ;;  %2877 = vmatpush3.bf16.msra.mxu1 %v2377_v49  ;;  %v1899_v2 = vld [vmem:[#allocation16 + $0x28] sm:$0xf] }
 0x42b   :  { %2884 = vmatprep.subr.bf16.mxu0 %v3258_v0  ;;  %2878 = vmatprep.subr.bf16.mxu1 %v3258_v0  ;;  %v2389_v4 = vcombine.low %v1899_v2, %v1900_v3  ;;  %v2094_v5 = vadd.bf16 %v1899_v2, %v3919_v34  ;;  %v2384_v34 = vcombine.low %v1889_v32, %v1890_v33 }
 0x42d   :  { %2861 = vmatmul.mubr.bf16.vlgmr.msra.gmra.mxu0 %v1743_v37  ;;  %v2397_v7 = vcombine.low %v2094_v5, %v2095_v6  ;;  %v2392_v37 = vcombine.low %v2084_v35, %v2085_v36  ;;  %v2400_v6 = vld [vmem:[%s4017_s12] ss:$0 sm:$0xff]  ;;  %s3194_s12 = scalar_lea.vmem %s2214_s3, 128 }
 0x42e   :  { %2900 = vmatprep.mubr.msk.bf16.mxu0 %vm3259_vm0, %v3258_v0  ;;  %2885 = vmatpush3.bf16.msra.mxu0 %v2391_v55  ;;  %p3195_p12 = scmp.ne.s32.totalorder %s2214_s3, %s3194_s12  ;;  %p3200_p0 = scmp.lt.s32.totalorder %s3194_s12, %s3194_s12 }
 0x42f   :  { %2879 = vmatpush3.bf16.msra.mxu1 %v2376_v53  ;;  %2886 = vmatprep.subr.bf16.mxu0 %v3258_v0 }
 0x430   :  { %2904 = vmatprep.subr.bf16.mxu1 %v3258_v0  ;;  %p3201_p1 = por %p3200_p0, %p3199_p13 }
 0x432   :  { %2887 = vmatpush3.bf16.msra.mxu0 %v2390_v61  ;;  %p3202_p2 = pnand %p3201_p1, %p3195_p12 }
 0x433   :  { %2888 = vmatprep.subr.bf16.mxu0 %v3258_v0 }
 0x436   :  { %2889 = vmatpush3.bf16.msra.mxu0 %v2389_v4 }
 0x437   :  { %2890 = vmatprep.subr.bf16.mxu0 %v3258_v0 }
 0x43a   :  { %2891 = vmatpush3.bf16.msra.mxu0 %v2388_v10 }
 0x43b   :  { %2892 = vmatprep.subr.bf16.mxu0 %v3258_v0 }
 0x43e   :  { %2893 = vmatpush3.bf16.msra.mxu0 %v2387_v16 }
 0x43f   :  { %2894 = vmatprep.subr.bf16.mxu0 %v3258_v0 }
 0x442   :  { %2895 = vmatpush3.bf16.msra.mxu0 %v2386_v22 }
 0x443   :  { %2896 = vmatprep.subr.bf16.mxu0 %v3258_v0 }
 0x446   :  { %2897 = vmatpush3.bf16.msra.mxu0 %v2385_v28 }
 0x447   :  { %2898 = vmatprep.subr.bf16.mxu0 %v3258_v0 }
 0x44a   :  { %2899 = vmatpush3.bf16.msra.mxu0 %v2384_v34 }
 0x4cd   :  { %v1649_v38 = vpop.f32.mrf.mxu0 }
 0x4cf   :  { %v2822_v39 = vpop.f32.mrf.mxu0 }
 0x4d1   :  { %v1652_v40 = vpop.f32.mrf.mxu0  ;;  %v1737_v42 = vpop.f32.mrf.mxu1 }
 0x4d2   :  { %v1848_v43 = vsub.f32 %v1649_v38, %v1737_v42 }
 0x4d3   :  { %v2823_v44 = vpop.f32.mrf.mxu0  ;;  %v2842_v45 = vpop.f32.mrf.mxu1 }
 0x4d4   :  { %v1855_v46 = vadd.f32 %v2374_v41, %v1848_v43 }
 0x4d5   :  { %v1740_v47 = vpop.f32.mrf.mxu1 }
 0x4d6   :  { %v1865_v48 = vmax.f32 %v1855_v46, 0.0 }
 0x4d7   :  { %v2843_v49 = vpop.f32.mrf.mxu1 }
 0x4d8   :  { %v1866_v50 = vpack.c.bf16 %v1865_v48, %v1865_v48 }
 0x4da   :  { %1867 = vst [vmem:[#allocation2] sm:$0xf] %v1866_v50 }
 0x4e1   :  { %v1871_v51 = vld [vmem:[#allocation2] sm:$0xf] }
 0x4e2   :  { %2881 = vmatmul.mubr.bf16.vlgmr.msra.gmra.mxu1 %v1871_v51 }
 0x4e3   :  { %2905 = vmatpush3.bf16.msra.mxu1 %v3958_v58  ;;  %2920 = vmatprep.mubr.msk.bf16.mxu1 %vm3259_vm0, %v3258_v0 }
 0x4e4   :  { %2906 = vmatprep.subr.bf16.mxu1 %v3258_v0 }
 0x4e7   :  { %2907 = vmatpush3.bf16.msra.mxu1 %v3962_v1 }
 0x4e8   :  { %2908 = vmatprep.subr.bf16.mxu1 %v3258_v0 }
 0x4eb   :  { %2909 = vmatpush3.bf16.msra.mxu1 %v2397_v7 }
 0x4ec   :  { %2910 = vmatprep.subr.bf16.mxu1 %v3258_v0 }
 0x4ed   :  { %v1842_v52 = vpop.f32.mrf.mxu0 }
 0x4ee   :  { %v1856_v53 = vsub.f32 %v1842_v52, %v1649_v38 }
 0x4ef   :  { %v2862_v55 = vpop.f32.mrf.mxu0  ;;  %2911 = vmatpush3.bf16.msra.mxu1 %v2396_v13  ;;  %v2401_v13 = vld [vmem:[%s4018_s13] ss:$0 sm:$0xff] }
 0x4f0   :  { %v1857_v56 = vsub.f32 %v1856_v53, %v1737_v42  ;;  %2912 = vmatprep.subr.bf16.mxu1 %v3258_v0 }
 0x4f1   :  { %v1845_v57 = vpop.f32.mrf.mxu0 }
 0x4f2   :  { %v1864_v58 = vadd.f32 %v2375_v54, %v1857_v56 }
 0x4f3   :  { %v2863_v59 = vpop.f32.mrf.mxu0  ;;  %2913 = vmatpush3.bf16.msra.mxu1 %v2395_v19 }
 0x4f4   :  { %v1868_v60 = vmax.f32 %v1864_v58, 0.0  ;;  %2914 = vmatprep.subr.bf16.mxu1 %v3258_v0 }
 0x4f6   :  { %v1869_v61 = vpack.c.bf16 %v1868_v60, %v1868_v60 }
 0x4f7   :  { %2915 = vmatpush3.bf16.msra.mxu1 %v2394_v25 }
 0x4f8   :  { %1870 = vst [vmem:[#allocation3] sm:$0xf] %v1869_v61  ;;  %2916 = vmatprep.subr.bf16.mxu1 %v3258_v0 }
 0x4fb   :  { %2917 = vmatpush3.bf16.msra.mxu1 %v2393_v31 }
 0x4fc   :  { %2918 = vmatprep.subr.bf16.mxu1 %v3258_v0 }
 0x4ff   :  { %2919 = vmatpush3.bf16.msra.mxu1 %v2392_v37  ;;  %v1872_v62 = vld [vmem:[#allocation3] sm:$0xf] }
 0x500   :  { %2901 = vmatmul.mubr.bf16.vlgmr.msra.gmra.mxu0 %v1872_v62  ;;  %v2083_v63 = vadd.bf16 %v1872_v62, %v1871_v51 }
 0x502   :  { %2921 = vmatmul.mubr.bf16.vlgmr.msra.gmra.mxu1 %v2083_v63 }
 0x5a2   :  { %v1989_v1 = vpop.f32.mrf.mxu1 }
 0x5a4   :  { %v2882_v2 = vpop.f32.mrf.mxu1 }
 0x5a6   :  { %v1992_v3 = vpop.f32.mrf.mxu1 }
 0x5a8   :  { %v2883_v4 = vpop.f32.mrf.mxu1 }
 0x5c0   :  { %v2077_v5 = vpop.f32.mrf.mxu0 }
 0x5c1   :  { %v2188_v7 = vsub.f32 %v1989_v1, %v2077_v5 }
 0x5c2   :  { %v2902_v8 = vpop.f32.mrf.mxu0  ;;  %v2182_v9 = vpop.f32.mrf.mxu1 }
 0x5c3   :  { %v2196_v0 = vsub.f32 %v2182_v9, %v1989_v1  ;;  %v2195_v10 = vadd.f32 %v2400_v6, %v2188_v7 }
 0x5c4   :  { %v2080_v11 = vpop.f32.mrf.mxu0  ;;  %v2922_v12 = vpop.f32.mrf.mxu1 }
 0x5c5   :  { %v2197_v14 = vsub.f32 %v2196_v0, %v2077_v5  ;;  %2205 = vst [vmem:[#allocation18] sm:$0xff] %v2195_v10 }
 0x5c6   :  { %v2903_v15 = vpop.f32.mrf.mxu0  ;;  %v2185_v16 = vpop.f32.mrf.mxu1 }
 0x5c7   :  { %3205 = shalt.err (!%p3202_p2)
}
 0x5c8   :  { %2216 = dma.vmem_to_hbm [thread:$0]  %s2214_s3, 128, %s4019_s14, [#allocation6]   ;;  %v2204_v17 = vadd.f32 %v2401_v13, %v2197_v14  ;;  %v2923_v18 = vpop.f32.mrf.mxu1 }
 0x5c9   :  { %s3214_s13 = scalar_lea.vmem %s2224_s6, 128  ;;  %p3219_p4 = scmp.lt.s32.totalorder %s2224_s6, %s2224_s6 }
 0x5ca   :  { %2206 = vst [vmem:[#allocation19] sm:$0xff] %v2204_v17  ;;  %p3215_p3 = scmp.ne.s32.totalorder %s2224_s6, %s3214_s13  ;;  %p3220_p5 = scmp.lt.s32.totalorder %s3214_s13, %s3214_s13 }
 0x5cc   :  { %p3221_p6 = por %p3220_p5, %p3219_p4 }
 0x5ce   :  { %p3222_p7 = pnand %p3221_p6, %p3215_p3 }
 0x5d0   :  { %3225 = shalt.err (!%p3222_p7)
}
 0x5d1   :  { %2226 = dma.vmem_to_hbm [thread:$0]  %s2224_s6, 128, %s4020_s15, [#allocation20]  }
 0x5d2   :  { %3244 = dma.done.wait [#allocation6], 128  }
 0x5d3   :  { %3245 = vsyncadd [#allocation6], 4294967168 }
 0x5d4   :  { %3246 = dma.done.wait [#allocation20], 128  }
 0x5d5   :  { %3247 = vsyncadd [#allocation20], 4294967168 }
 0x5d6   :  { %2233 = vsyncpa [#allocation5], 1 }
 0x5d7   :  { %2234 = vsyncpa [#allocation8], 1 }
 0x5d8   :  { %2235 = vsyncpa [#allocation11], 1 }
 0x5d9   :  { %2236 = vsyncpa [#allocation14], 1 }
 0x5da   :  { %2237 = vsyncpa [#allocation17], 1 }
 0x5db   :  { %2238 = vsyncpa [#allocation6], 1 }
 0x5dc   :  { %2239 = vsyncpa [#allocation20], 1 }

</bundles_post_ra>
